<compile_context>
chip_gen: v7x
topology: tpu7x:2x2x1
jax: 0.10.0
libtpu: 0.0.40
codegen_flags: <defaults>
</compile_context>

<pallas_src>
import math
import functools

import jax
import jax.numpy as jnp
from jax.experimental import pallas as pl
from jax.experimental.pallas import tpu as pltpu

EPS = 1e-5  # nn.GroupNorm default eps


# ----------------------------------------------------------------------------
# fused kernel: ResBlock (scale-shift norm) + AttentionBlock (rel-pos bias)
# ----------------------------------------------------------------------------
def diffusion_layer_kernel(
        x_ref, temb_ref,
        w_emb_ref, b_emb_ref,
        in_g_ref, in_b_ref, w_in_ref, b_in_ref,
        out_g_ref, out_b_ref, w_out_ref, b_out_ref,
        attn_g_ref, attn_b_ref,
        w_qkv_ref, b_qkv_ref, bias_ref, bd_ref,
        w_proj_ref, b_proj_ref,
        gmask_ref, gmask_t_ref,
        o_ref, *, num_heads, groups, matmul_dtype, exact_softmax):
    Bb, T, C = x_ref.shape                      # Bb = batch elements in this block
    BT = Bb * T
    H = num_heads
    cg = C // groups
    f32 = jnp.float32
    md = matmul_dtype

    def mm(a, b):                               # MXU matmul, f32 accumulate
        return jnp.dot(a.astype(md), b.astype(md), preferred_element_type=f32)

    def mm_t(a, b):                             # a @ b.T on the MXU
        return jax.lax.dot_general(a.astype(md), b.astype(md),
                                   (((1,), (1,)), ((), ())),
                                   preferred_element_type=f32)

    def silu(v):
        return v * jax.nn.sigmoid(v)

    def group_norm(xf, gamma, beta):
        """GroupNorm with per-(batch, group) stats; xf is (BT, C), stats in f32.

        For C//G == 2 the group reduce/broadcast is done with lane rolls
        (XLU/VPU, no MXU push); otherwise the one-hot mask matmuls are used.
        """
        n = float(T * cg)
        parts = []
        for b in range(Bb):                                    # static, tiny
            xb = xf[b * T:(b + 1) * T]                         # (T, C)
            s1 = jnp.sum(xb, axis=0, keepdims=True)            # (1, C)
            s2 = jnp.sum(xb * xb, axis=0, keepdims=True)       # (1, C)
            st = jnp.concatenate([s1, s2], axis=0)             # (2, C) [sum; sumsq]
            if cg == 2:
                nxt = pltpu.roll(st, C - 1, axis=1)            # st[c+1 mod C]
                prv = pltpu.roll(st, 1, axis=1)                # st[c-1 mod C]
                lane = jax.lax.broadcasted_iota(jnp.int32, st.shape, 1)
                gsum = st + jnp.where(lane % 2 == 0, nxt, prv)  # pair sums / channel
            else:
                gg = jnp.dot(st, gmask_ref[...], preferred_element_type=f32)
                gsum = jnp.dot(gg, gmask_t_ref[...], preferred_element_type=f32)
            mean = gsum[0:1] / n
            var = gsum[1:2] / n - mean * mean
            parts.append((xb - mean) * jax.lax.rsqrt(var + EPS))
        return jnp.concatenate(parts, axis=0) * gamma + beta

    xf = x_ref[...].reshape(BT, C)                             # (BT, C) f32

    # ---- fused timestep embedding: SiLU -> Linear(C, 2C) -> split scale/shift
    e = mm(silu(temb_ref[...]), w_emb_ref[...]) + b_emb_ref[...]   # (Bb, 2C)
    scale = e[:, :C]
    shift = e[:, C:]

    # ------------------------------ ResBlock ------------------------------
    h = silu(group_norm(xf, in_g_ref[...], in_b_ref[...]))
    h = mm(h, w_in_ref[...]) + b_in_ref[...]                   # Conv1d k=1
    h = group_norm(h, out_g_ref[...], out_b_ref[...])
    h = jnp.concatenate(                                       # scale-shift (per batch)
        [h[b * T:(b + 1) * T] * (1.0 + scale[b:b + 1]) + shift[b:b + 1]
         for b in range(Bb)], axis=0)
    h = silu(h)
    # TODO(synk): Dropout is identity here (inference / eval mode).

    # Conv1d(k=3, pad=1): sublane rolls with per-sequence boundary masking, then a
    # single (BT, 3C) @ (3C, C) matmul (contraction K = 3C instead of 3 x K = C).
    rowmod = jax.lax.broadcasted_iota(jnp.int32, (BT, C), 0) % T
    h_prev = jnp.where(rowmod == 0, 0.0, pltpu.roll(h, 1, axis=0))       # h[t-1]
    h_next = jnp.where(rowmod == T - 1, 0.0, pltpu.roll(h, BT - 1, axis=0))  # h[t+1]
    hcat = jnp.concatenate([h_prev, h, h_next], axis=1)                  # (BT, 3C)
    y = xf + mm(hcat, w_out_ref[...]) + b_out_ref[...]         # skip; stays in VMEM

    # --------------------------- AttentionBlock ---------------------------
    yn = group_norm(y, attn_g_ref[...], attn_b_ref[...])
    # q/k columns are pre-scaled by 1/sqrt(sqrt(ch)) and reordered to [q|k|v].
    qkv = mm(yn, w_qkv_ref[...]) + b_qkv_ref[...]              # (BT, 3C)
    bd = bd_ref[...]                                           # (H*T, C) block-diag head mask
    bias2 = bias_ref[...]                                      # (H*T, T) rel-pos bias

    a_parts = []
    for b in range(Bb):                                        # static loop over batch
        rows = slice(b * T, (b + 1) * T)
        q = qkv[rows, 0:C]
        k = qkv[rows, C:2 * C]
        v = qkv[rows, 2 * C:3 * C]
        # block-diagonal q: row h*T+t keeps only head-h channels
        qm = jnp.concatenate([q] * H, axis=0) * bd             # (H*T, C)
        logits = mm_t(qm, k) + bias2                           # all heads' q.k^T in one matmul
        logits = logits - jnp.max(logits, axis=-1, keepdims=True)
        p = jnp.exp(logits)
        den = jnp.sum(p, axis=-1, keepdims=True)
        if exact_softmax:
            p = p / den
        else:
            p = p * pl.reciprocal(den, approx=True)            # EUP slot (bf16 fast path)
        a2 = mm(p, v) * bd                                     # (H*T, C); one AV matmul
        ab = a2[0:T]                                           # fold head blocks back
        for hh in range(1, H):
            ab = ab + a2[hh * T:(hh + 1) * T]
        a_parts.append(ab)
    a_all = jnp.concatenate(a_parts, axis=0)                   # (BT, C)
    o = y + mm(a_all, w_proj_ref[...]) + b_proj_ref[...]
    o_ref[...] = o.reshape(Bb, T, C)


# ----------------------------------------------------------------------------
# glue: group count, relative-position buckets, parameter prep, wrapper
# ----------------------------------------------------------------------------
def norm_groups(channels):
    groups = 32
    if channels <= 16:
        groups = 8
    elif channels <= 64:
        groups = 16
    while channels % groups != 0:
        groups //= 2
    assert groups > 2
    return groups


def _relative_position_bucket(rel, num_buckets=32, max_distance=64):
    # causal=False branch of RelativePositionBias._relative_position_bucket
    n = -rel
    num_buckets = num_buckets // 2
    ret = (n < 0).astype(jnp.int32) * num_buckets
    n = jnp.abs(n)
    max_exact = num_buckets // 2
    is_small = n < max_exact
    val_large = max_exact + (jnp.log(jnp.maximum(n, 1).astype(jnp.float32) / max_exact)
                             / math.log(max_distance / max_exact)
                             * (num_buckets - max_exact)).astype(jnp.int32)
    val_large = jnp.minimum(val_large, num_buckets - 1)
    return ret + jnp.where(is_small, n, val_large)


def rel_pos_bias(T, emb_weight):
    pos = jnp.arange(T)
    rel = pos[None, :] - pos[:, None]              # k_pos - q_pos
    bucket = _relative_position_bucket(rel)        # (T, T)
    values = emb_weight[bucket]                    # (T, T, H)
    return jnp.transpose(values, (2, 0, 1))        # (H, T, T)


def prep_kernel_params(p, T, num_heads, matmul_dtype=jnp.float32):
    """Build the kernel-ready operand dict: reordered / scaled / flattened / pre-cast."""
    C = p["w_in"].shape[0]
    G = int(p["groups"])
    H = num_heads
    ch = C // H
    md = matmul_dtype
    f32 = jnp.float32

    # qkv columns: [H, (q,k,v), ch] -> [q | k | v] (head-major inside each section),
    # with the 1/sqrt(sqrt(ch)) attention scale folded into the q and k columns.
    perm = jnp.transpose(jnp.arange(3 * C).reshape(H, 3, ch), (1, 0, 2)).reshape(-1)
    s = 1.0 / math.sqrt(math.sqrt(ch))
    col_scale = jnp.concatenate([jnp.full((2 * C,), s, f32), jnp.ones((C,), f32)])
    w_qkv = p["w_qkv"][:, perm] * col_scale[None, :]
    b_qkv = p["b_qkv"][:, perm] * col_scale[None, :]

    # block-diagonal head mask (H*T, C): row h*T+t keeps head-h channels only
    head_of_row = jnp.arange(H * T) // T
    head_of_col = jnp.arange(C) // ch
    bd_mask = (head_of_row[:, None] == head_of_col[None, :]).astype(f32)

    # relative-position bias, pre-scaled by sqrt(ch), laid out (H*T, T)
    attn_bias = (rel_pos_bias(T, p["rel_emb"]) * math.sqrt(ch)).reshape(H * T, T).astype(f32)
    # TODO(synk): at production T, store this bf16 / generate it in-kernel flash-style
    # so the O(H*T^2) bias stays inside v7x's 64 MiB VMEM.

    # group one-hot masks (only used when C // G != 2)
    cg = C // G
    gmask = (jnp.arange(C)[:, None] // cg == jnp.arange(G)[None, :]).astype(f32)

    return {
        "groups": G,
        "w_emb": p["w_emb"].astype(md), "b_emb": p["b_emb"].astype(f32),
        "in_gamma": p["in_gamma"], "in_beta": p["in_beta"],
        "w_in": p["w_in"].astype(md), "b_in": p["b_in"],
        "out_gamma": p["out_gamma"], "out_beta": p["out_beta"],
        "w_out": p["w_out3"].reshape(3 * C, C).astype(md), "b_out": p["b_out"],
        "attn_gamma": p["attn_gamma"], "attn_beta": p["attn_beta"],
        "w_qkv": w_qkv.astype(md), "b_qkv": b_qkv.astype(f32),
        "attn_bias": attn_bias, "bd_mask": bd_mask,
        "w_proj": p["w_proj"].astype(md), "b_proj": p["b_proj"],
        "gmask": gmask, "gmask_t": gmask.T,
    }


def diffusion_layer_forward(x_btc, time_emb, kp, num_heads, *,
                            matmul_dtype=jnp.float32, fold_batch=True):
    B, T, C = x_btc.shape
    G = int(kp["groups"])
    bblk = B if fold_batch else 1          # fold_batch: one grid step (v5e/v6e); else one per TC (v7x)
    assert B % bblk == 0
    exact = (matmul_dtype == jnp.float32)

    x_spec = pl.BlockSpec((bblk, T, C), lambda i: (i, 0, 0))
    temb_spec = pl.BlockSpec((bblk, C), lambda i: (i, 0))

    const_args = (
        kp["w_emb"], kp["b_emb"],
        kp["in_gamma"], kp["in_beta"], kp["w_in"], kp["b_in"],
        kp["out_gamma"], kp["out_beta"], kp["w_out"], kp["b_out"],
        kp["attn_gamma"], kp["attn_beta"],
        kp["w_qkv"], kp["b_qkv"], kp["attn_bias"], kp["bd_mask"],
        kp["w_proj"], kp["b_proj"],
        kp["gmask"], kp["gmask_t"],
    )
    # TODO(synk): for the grid=(B,) path at larger shapes, mark these constant specs
    # pipeline_mode=pl.Buffered(1) to skip double-buffering; moot for the single-step default.
    const_specs = [pl.BlockSpec(a.shape, lambda i, _n=a.ndim: (0,) * _n) for a in const_args]

    return pl.pallas_call(
        functools.partial(diffusion_layer_kernel, num_heads=num_heads, groups=G,
                          matmul_dtype=matmul_dtype, exact_softmax=exact),
        out_shape=jax.ShapeDtypeStruct((B, T, C), jnp.float32),
        grid=(B // bblk,),
        in_specs=[x_spec, temb_spec] + const_specs,
        out_specs=x_spec,
        compiler_params=pltpu.CompilerParams(dimension_semantics=("parallel",)),
    )(x_btc, time_emb, *const_args)


# pure-JAX reference (same math as the PyTorch module) for validation
def reference_forward(x_btc, time_emb, params, num_heads):
    B, T, C = x_btc.shape
    G = params["groups"]

    def gn(x, gamma, beta):
        xg = x.reshape(B, T, G, C // G)
        mean = xg.mean(axis=(1, 3), keepdims=True)
        var = ((xg - mean) ** 2).mean(axis=(1, 3), keepdims=True)
        xn = ((xg - mean) / jnp.sqrt(var + EPS)).reshape(B, T, C)
        return xn * gamma + beta

    silu = lambda v: v * jax.nn.sigmoid(v)

    h = silu(gn(x_btc, params["in_gamma"], params["in_beta"]))
    h = h @ params["w_in"] + params["b_in"]
    emb_out = silu(time_emb) @ params["w_emb"] + params["b_emb"]
    scale, shift = emb_out[:, None, :C], emb_out[:, None, C:]
    h = gn(h, params["out_gamma"], params["out_beta"]) * (1.0 + scale) + shift
    h = silu(h)
    hp = jnp.pad(h, ((0, 0), (1, 1), (0, 0)))
    out = (hp[:, :-2] @ params["w_out3"][0] + hp[:, 1:-1] @ params["w_out3"][1]
           + hp[:, 2:] @ params["w_out3"][2] + params["b_out"])
    y = x_btc + out

    yn = gn(y, params["attn_gamma"], params["attn_beta"])
    qkv = (yn @ params["w_qkv"] + params["b_qkv"]).reshape(B, T, num_heads, 3, C // num_heads)
    q, k, v = qkv[..., 0, :], qkv[..., 1, :], qkv[..., 2, :]
    s = 1.0 / math.sqrt(math.sqrt(C // num_heads))
    w = jnp.einsum("bthc,bshc->bhts", q * s, k * s)
    bias = rel_pos_bias(T, params["rel_emb"]) * math.sqrt(C // num_heads)
    w = jax.nn.softmax(w + bias[None], axis=-1)
    a = jnp.einsum("bhts,bshc->bthc", w, v).reshape(B, T, C)
    return y + (a @ params["w_proj"] + params["b_proj"])


def make_params(key, C, num_heads):
    G = norm_groups(C)
    ks = jax.random.split(key, 11)
    rnd = lambda k, shape, s=0.1: (jax.random.normal(k, shape) * s).astype(jnp.float32)
    return {
        "groups": G,
        # ResBlock
        "in_gamma": jnp.ones((1, C), jnp.float32), "in_beta": jnp.zeros((1, C), jnp.float32),
        "w_in": rnd(ks[0], (C, C)), "b_in": rnd(ks[1], (1, C), 0.02),
        "w_emb": rnd(ks[2], (C, 2 * C)), "b_emb": rnd(ks[3], (1, 2 * C), 0.02),
        "out_gamma": jnp.ones((1, C), jnp.float32), "out_beta": jnp.zeros((1, C), jnp.float32),
        "w_out3": rnd(ks[4], (3, C, C)), "b_out": rnd(ks[5], (1, C), 0.02),
        # AttentionBlock
        "attn_gamma": jnp.ones((1, C), jnp.float32), "attn_beta": jnp.zeros((1, C), jnp.float32),
        "w_qkv": rnd(ks[6], (C, 3 * C)), "b_qkv": rnd(ks[7], (1, 3 * C), 0.02),
        # NOTE: the module zero-inits proj_out; nonzero here so the attention path is exercised.
        "w_proj": rnd(ks[8], (C, C)), "b_proj": rnd(ks[9], (1, C), 0.02),
        "rel_emb": rnd(ks[10], (32, num_heads), 0.5),
    }


if __name__ == "__main__":
    B, C, T, num_heads = 2, 32, 16, 4   # model_channels=32, emb_channels=32, heads=4

    key = jax.random.PRNGKey(0)
    kx, ke, kp = jax.random.split(key, 3)
    x_bct = jax.random.normal(kx, (B, C, T), dtype=jnp.float32)     # PyTorch layout (N, C, L)
    time_emb = jax.random.normal(ke, (B, C), dtype=jnp.float32)
    params = make_params(kp, C, num_heads)

    x_btc = jnp.transpose(x_bct, (0, 2, 1))                         # kernel layout (B, T, C)
    ref_btc = reference_forward(x_btc, time_emb, params, num_heads)

    # strict f32 path, batch folded into a single grid step (v5e/v6e single-TC layout)
    kp_f32 = prep_kernel_params(params, T, num_heads, jnp.float32)
    out_f32 = jax.block_until_ready(diffusion_layer_forward(
        x_btc, time_emb, kp_f32, num_heads, matmul_dtype=jnp.float32, fold_batch=True))
    assert out_f32.shape == (B, T, C)
    assert jnp.allclose(out_f32, ref_btc, rtol=1e-3, atol=1e-3)

    # grid=(B,) "parallel" path (one batch element per v7x TensorCore)
    out_grid = jax.block_until_ready(diffusion_layer_forward(
        x_btc, time_emb, kp_f32, num_heads, matmul_dtype=jnp.float32, fold_batch=False))
    assert jnp.allclose(out_grid, ref_btc, rtol=1e-3, atol=1e-3)

    # v6e / v7x fast path: bf16 MXU inputs, f32 accumulation and f32 GroupNorm stats
    kp_bf16 = prep_kernel_params(params, T, num_heads, jnp.bfloat16)
    out_bf16 = jax.block_until_ready(diffusion_layer_forward(
        x_btc, time_emb, kp_bf16, num_heads, matmul_dtype=jnp.bfloat16, fold_batch=True))
    assert jnp.allclose(out_bf16, ref_btc, rtol=4e-2, atol=4e-2)

    out_bct = jnp.transpose(out_f32, (0, 2, 1))                     # back to PyTorch layout
    assert out_bct.shape == (B, C, T)

    print("KERNEL_OK")
</pallas_src>

<mosaic_0001>
module attributes {stable_mosaic.version = 11 : i64} {
  func.func @diffusion_layer_kernel(%arg0: i32, %arg1: memref<2x16x32xf32, #tpu.memory_space<vmem>>, %arg2: memref<2x32xf32, #tpu.memory_space<vmem>>, %arg3: memref<32x64xf32, #tpu.memory_space<vmem>>, %arg4: memref<1x64xf32, #tpu.memory_space<vmem>>, %arg5: memref<1x32xf32, #tpu.memory_space<vmem>>, %arg6: memref<1x32xf32, #tpu.memory_space<vmem>>, %arg7: memref<32x32xf32, #tpu.memory_space<vmem>>, %arg8: memref<1x32xf32, #tpu.memory_space<vmem>>, %arg9: memref<1x32xf32, #tpu.memory_space<vmem>>, %arg10: memref<1x32xf32, #tpu.memory_space<vmem>>, %arg11: memref<96x32xf32, #tpu.memory_space<vmem>>, %arg12: memref<1x32xf32, #tpu.memory_space<vmem>>, %arg13: memref<1x32xf32, #tpu.memory_space<vmem>>, %arg14: memref<1x32xf32, #tpu.memory_space<vmem>>, %arg15: memref<32x96xf32, #tpu.memory_space<vmem>>, %arg16: memref<1x96xf32, #tpu.memory_space<vmem>>, %arg17: memref<64x16xf32, #tpu.memory_space<vmem>>, %arg18: memref<64x32xf32, #tpu.memory_space<vmem>>, %arg19: memref<32x32xf32, #tpu.memory_space<vmem>>, %arg20: memref<1x32xf32, #tpu.memory_space<vmem>>, %arg21: memref<32x16xf32, #tpu.memory_space<vmem>>, %arg22: memref<16x32xf32, #tpu.memory_space<vmem>>, %arg23: memref<2x16x32xf32, #tpu.memory_space<vmem>>) attributes {dimension_semantics = [#tpu.dimension_semantics<parallel>], iteration_bounds = array<i64: 1>, scalar_prefetch = 0 : i64, scratch_operands = 0 : i64, tpu.core_type = #tpu.core_type<tc>, window_params = [{transform_indices = @transform_0, window_bounds = array<i64: 2, 16, 32>}, {transform_indices = @transform_1, window_bounds = array<i64: 2, 32>}, {pipeline_mode = #tpu.pipeline_mode<synchronous>, transform_indices = @transform_2, window_bounds = array<i64: 32, 64>}, {pipeline_mode = #tpu.pipeline_mode<synchronous>, transform_indices = @transform_3, window_bounds = array<i64: 1, 64>}, {pipeline_mode = #tpu.pipeline_mode<synchronous>, transform_indices = @transform_4, window_bounds = array<i64: 1, 32>}, {pipeline_mode = #tpu.pipeline_mode<synchronous>, transform_indices = @transform_5, window_bounds = array<i64: 1, 32>}, {pipeline_mode = #tpu.pipeline_mode<synchronous>, transform_indices = @transform_6, window_bounds = array<i64: 32, 32>}, {pipeline_mode = #tpu.pipeline_mode<synchronous>, transform_indices = @transform_7, window_bounds = array<i64: 1, 32>}, {pipeline_mode = #tpu.pipeline_mode<synchronous>, transform_indices = @transform_8, window_bounds = array<i64: 1, 32>}, {pipeline_mode = #tpu.pipeline_mode<synchronous>, transform_indices = @transform_9, window_bounds = array<i64: 1, 32>}, {pipeline_mode = #tpu.pipeline_mode<synchronous>, transform_indices = @transform_10, window_bounds = array<i64: 96, 32>}, {pipeline_mode = #tpu.pipeline_mode<synchronous>, transform_indices = @transform_11, window_bounds = array<i64: 1, 32>}, {pipeline_mode = #tpu.pipeline_mode<synchronous>, transform_indices = @transform_12, window_bounds = array<i64: 1, 32>}, {pipeline_mode = #tpu.pipeline_mode<synchronous>, transform_indices = @transform_13, window_bounds = array<i64: 1, 32>}, {pipeline_mode = #tpu.pipeline_mode<synchronous>, transform_indices = @transform_14, window_bounds = array<i64: 32, 96>}, {pipeline_mode = #tpu.pipeline_mode<synchronous>, transform_indices = @transform_15, window_bounds = array<i64: 1, 96>}, {pipeline_mode = #tpu.pipeline_mode<synchronous>, transform_indices = @transform_16, window_bounds = array<i64: 64, 16>}, {pipeline_mode = #tpu.pipeline_mode<synchronous>, transform_indices = @transform_17, window_bounds = array<i64: 64, 32>}, {pipeline_mode = #tpu.pipeline_mode<synchronous>, transform_indices = @transform_18, window_bounds = array<i64: 32, 32>}, {pipeline_mode = #tpu.pipeline_mode<synchronous>, transform_indices = @transform_19, window_bounds = array<i64: 1, 32>}, {pipeline_mode = #tpu.pipeline_mode<synchronous>, transform_indices = @transform_20, window_bounds = array<i64: 32, 16>}, {pipeline_mode = #tpu.pipeline_mode<synchronous>, transform_indices = @transform_21, window_bounds = array<i64: 16, 32>}, {transform_indices = @transform_22, window_bounds = array<i64: 2, 16, 32>}]} {
    %c0 = arith.constant 0 : index
    %c0_0 = arith.constant 0 : index
    %c0_1 = arith.constant 0 : index
    %0 = vector.load %arg1[%c0, %c0_0, %c0_1] : memref<2x16x32xf32, #tpu.memory_space<vmem>>, vector<2x16x32xf32>
    %1 = vector.shape_cast %0 : vector<2x16x32xf32> to vector<32x32xf32>
    %c0_2 = arith.constant 0 : index
    %c0_3 = arith.constant 0 : index
    %2 = vector.load %arg2[%c0_2, %c0_3] : memref<2x32xf32, #tpu.memory_space<vmem>>, vector<2x32xf32>
    %3 = arith.negf %2 : vector<2x32xf32>
    %4 = math.exp %3 : vector<2x32xf32>
    %cst = arith.constant 1.000000e+00 : f32
    %5 = vector.broadcast %cst : f32 to vector<2x32xf32>
    %6 = arith.addf %5, %4 : vector<2x32xf32>
    %7 = arith.divf %5, %6 : vector<2x32xf32>
    %8 = arith.mulf %2, %7 : vector<2x32xf32>
    %c0_4 = arith.constant 0 : index
    %c0_5 = arith.constant 0 : index
    %9 = vector.load %arg3[%c0_4, %c0_5] : memref<32x64xf32, #tpu.memory_space<vmem>>, vector<32x64xf32>
    %cst_6 = arith.constant dense<0.000000e+00> : vector<2x64xf32>
    %10 = tpu.matmul %8, %9, %cst_6 {dimension_numbers = #tpu.dot_dimension_numbers<[1], [0], [0], [1], [0, 0, 1, 1], [], []>} : vector<2x32xf32>, vector<32x64xf32>, vector<2x64xf32> -> vector<2x64xf32>
    %c0_7 = arith.constant 0 : index
    %c0_8 = arith.constant 0 : index
    %11 = vector.load %arg4[%c0_7, %c0_8] : memref<1x64xf32, #tpu.memory_space<vmem>>, vector<1x64xf32>
    %12 = vector.broadcast %11 : vector<1x64xf32> to vector<2x64xf32>
    %13 = arith.addf %10, %12 : vector<2x64xf32>
    %14 = vector.extract_strided_slice %13 {offsets = [0, 0], sizes = [2, 32], strides = [1, 1]} : vector<2x64xf32> to vector<2x32xf32>
    %15 = vector.extract_strided_slice %13 {offsets = [0, 32], sizes = [2, 32], strides = [1, 1]} : vector<2x64xf32> to vector<2x32xf32>
    %c0_9 = arith.constant 0 : index
    %c0_10 = arith.constant 0 : index
    %16 = vector.load %arg5[%c0_9, %c0_10] : memref<1x32xf32, #tpu.memory_space<vmem>>, vector<1x32xf32>
    %c0_11 = arith.constant 0 : index
    %c0_12 = arith.constant 0 : index
    %17 = vector.load %arg6[%c0_11, %c0_12] : memref<1x32xf32, #tpu.memory_space<vmem>>, vector<1x32xf32>
    %18 = vector.extract_strided_slice %1 {offsets = [0, 0], sizes = [16, 32], strides = [1, 1]} : vector<32x32xf32> to vector<16x32xf32>
    %cst_13 = arith.constant dense<0.000000e+00> : vector<32xf32>
    %19 = vector.multi_reduction <add>, %18, %cst_13 [0] : vector<16x32xf32> to vector<32xf32>
    %20 = vector.shape_cast %19 : vector<32xf32> to vector<1x32xf32>
    %21 = arith.mulf %18, %18 : vector<16x32xf32>
    %cst_14 = arith.constant dense<0.000000e+00> : vector<32xf32>
    %22 = vector.multi_reduction <add>, %21, %cst_14 [0] : vector<16x32xf32> to vector<32xf32>
    %23 = vector.shape_cast %22 : vector<32xf32> to vector<1x32xf32>
    %24 = tpu.concatenate %20, %23 in 0 : vector<1x32xf32>, vector<1x32xf32> -> vector<2x32xf32>
    %c31_i32 = arith.constant 31 : i32
    %25 = tpu.dynamic_rotate %24 by %c31_i32 dim 1 : vector<2x32xf32>, i32 -> vector<2x32xf32>
    %c1_i32 = arith.constant 1 : i32
    %26 = tpu.dynamic_rotate %24 by %c1_i32 dim 1 : vector<2x32xf32>, i32 -> vector<2x32xf32>
    %27 = tpu.iota {dimensions = array<i32: 1>} : vector<2x32xi32>
    %c2_i32 = arith.constant 2 : i32
    %c0_i32 = arith.constant 0 : i32
    %28 = arith.cmpi eq, %c2_i32, %c0_i32 : i32
    %c1_i32_15 = arith.constant 1 : i32
    %29 = arith.select %28, %c1_i32_15, %c2_i32 : i32
    %30 = vector.broadcast %29 : i32 to vector<2x32xi32>
    %31 = arith.remsi %27, %30 : vector<2x32xi32>
    %c0_i32_16 = arith.constant 0 : i32
    %32 = vector.broadcast %c0_i32_16 : i32 to vector<2x32xi32>
    %33 = arith.cmpi ne, %31, %32 : vector<2x32xi32>
    %c0_i32_17 = arith.constant 0 : i32
    %34 = vector.broadcast %c0_i32_17 : i32 to vector<2x32xi32>
    %35 = arith.cmpi slt, %31, %34 : vector<2x32xi32>
    %c0_i32_18 = arith.constant 0 : i32
    %36 = arith.cmpi slt, %29, %c0_i32_18 : i32
    %37 = vector.broadcast %36 : i1 to vector<2x32xi1>
    %38 = vector.broadcast %37 : vector<2x32xi1> to vector<2x32xi1>
    %39 = arith.xori %35, %38 : vector<2x32xi1>
    %40 = arith.andi %39, %33 : vector<2x32xi1>
    %41 = vector.broadcast %29 : i32 to vector<2x32xi32>
    %42 = arith.addi %31, %41 : vector<2x32xi32>
    %43 = arith.select %40, %42, %31 : vector<2x32xi1>, vector<2x32xi32>
    %c0_i32_19 = arith.constant 0 : i32
    %44 = vector.broadcast %c0_i32_19 : i32 to vector<2x32xi32>
    %45 = arith.cmpi eq, %43, %44 : vector<2x32xi32>
    %46 = arith.select %45, %25, %26 : vector<2x32xi1>, vector<2x32xf32>
    %47 = arith.addf %24, %46 : vector<2x32xf32>
    %48 = vector.extract_strided_slice %47 {offsets = [0, 0], sizes = [1, 32], strides = [1, 1]} : vector<2x32xf32> to vector<1x32xf32>
    %cst_20 = arith.constant 3.200000e+01 : f32
    %49 = vector.broadcast %cst_20 : f32 to vector<1x32xf32>
    %50 = arith.divf %48, %49 : vector<1x32xf32>
    %51 = vector.extract_strided_slice %47 {offsets = [1, 0], sizes = [1, 32], strides = [1, 1]} : vector<2x32xf32> to vector<1x32xf32>
    %cst_21 = arith.constant 3.200000e+01 : f32
    %52 = vector.broadcast %cst_21 : f32 to vector<1x32xf32>
    %53 = arith.divf %51, %52 : vector<1x32xf32>
    %54 = arith.mulf %50, %50 : vector<1x32xf32>
    %55 = arith.subf %53, %54 : vector<1x32xf32>
    %56 = vector.broadcast %50 : vector<1x32xf32> to vector<16x32xf32>
    %57 = arith.subf %18, %56 : vector<16x32xf32>
    %cst_22 = arith.constant 9.99999974E-6 : f32
    %58 = vector.broadcast %cst_22 : f32 to vector<1x32xf32>
    %59 = arith.addf %55, %58 : vector<1x32xf32>
    %60 = math.rsqrt %59 : vector<1x32xf32>
    %61 = vector.broadcast %60 : vector<1x32xf32> to vector<16x32xf32>
    %62 = arith.mulf %57, %61 : vector<16x32xf32>
    %63 = vector.extract_strided_slice %1 {offsets = [16, 0], sizes = [16, 32], strides = [1, 1]} : vector<32x32xf32> to vector<16x32xf32>
    %cst_23 = arith.constant dense<0.000000e+00> : vector<32xf32>
    %64 = vector.multi_reduction <add>, %63, %cst_23 [0] : vector<16x32xf32> to vector<32xf32>
    %65 = vector.shape_cast %64 : vector<32xf32> to vector<1x32xf32>
    %66 = arith.mulf %63, %63 : vector<16x32xf32>
    %cst_24 = arith.constant dense<0.000000e+00> : vector<32xf32>
    %67 = vector.multi_reduction <add>, %66, %cst_24 [0] : vector<16x32xf32> to vector<32xf32>
    %68 = vector.shape_cast %67 : vector<32xf32> to vector<1x32xf32>
    %69 = tpu.concatenate %65, %68 in 0 : vector<1x32xf32>, vector<1x32xf32> -> vector<2x32xf32>
    %c31_i32_25 = arith.constant 31 : i32
    %70 = tpu.dynamic_rotate %69 by %c31_i32_25 dim 1 : vector<2x32xf32>, i32 -> vector<2x32xf32>
    %c1_i32_26 = arith.constant 1 : i32
    %71 = tpu.dynamic_rotate %69 by %c1_i32_26 dim 1 : vector<2x32xf32>, i32 -> vector<2x32xf32>
    %72 = tpu.iota {dimensions = array<i32: 1>} : vector<2x32xi32>
    %c2_i32_27 = arith.constant 2 : i32
    %c0_i32_28 = arith.constant 0 : i32
    %73 = arith.cmpi eq, %c2_i32_27, %c0_i32_28 : i32
    %c1_i32_29 = arith.constant 1 : i32
    %74 = arith.select %73, %c1_i32_29, %c2_i32_27 : i32
    %75 = vector.broadcast %74 : i32 to vector<2x32xi32>
    %76 = arith.remsi %72, %75 : vector<2x32xi32>
    %c0_i32_30 = arith.constant 0 : i32
    %77 = vector.broadcast %c0_i32_30 : i32 to vector<2x32xi32>
    %78 = arith.cmpi ne, %76, %77 : vector<2x32xi32>
    %c0_i32_31 = arith.constant 0 : i32
    %79 = vector.broadcast %c0_i32_31 : i32 to vector<2x32xi32>
    %80 = arith.cmpi slt, %76, %79 : vector<2x32xi32>
    %c0_i32_32 = arith.constant 0 : i32
    %81 = arith.cmpi slt, %74, %c0_i32_32 : i32
    %82 = vector.broadcast %81 : i1 to vector<2x32xi1>
    %83 = vector.broadcast %82 : vector<2x32xi1> to vector<2x32xi1>
    %84 = arith.xori %80, %83 : vector<2x32xi1>
    %85 = arith.andi %84, %78 : vector<2x32xi1>
    %86 = vector.broadcast %74 : i32 to vector<2x32xi32>
    %87 = arith.addi %76, %86 : vector<2x32xi32>
    %88 = arith.select %85, %87, %76 : vector<2x32xi1>, vector<2x32xi32>
    %c0_i32_33 = arith.constant 0 : i32
    %89 = vector.broadcast %c0_i32_33 : i32 to vector<2x32xi32>
    %90 = arith.cmpi eq, %88, %89 : vector<2x32xi32>
    %91 = arith.select %90, %70, %71 : vector<2x32xi1>, vector<2x32xf32>
    %92 = arith.addf %69, %91 : vector<2x32xf32>
    %93 = vector.extract_strided_slice %92 {offsets = [0, 0], sizes = [1, 32], strides = [1, 1]} : vector<2x32xf32> to vector<1x32xf32>
    %cst_34 = arith.constant 3.200000e+01 : f32
    %94 = vector.broadcast %cst_34 : f32 to vector<1x32xf32>
    %95 = arith.divf %93, %94 : vector<1x32xf32>
    %96 = vector.extract_strided_slice %92 {offsets = [1, 0], sizes = [1, 32], strides = [1, 1]} : vector<2x32xf32> to vector<1x32xf32>
    %cst_35 = arith.constant 3.200000e+01 : f32
    %97 = vector.broadcast %cst_35 : f32 to vector<1x32xf32>
    %98 = arith.divf %96, %97 : vector<1x32xf32>
    %99 = arith.mulf %95, %95 : vector<1x32xf32>
    %100 = arith.subf %98, %99 : vector<1x32xf32>
    %101 = vector.broadcast %95 : vector<1x32xf32> to vector<16x32xf32>
    %102 = arith.subf %63, %101 : vector<16x32xf32>
    %cst_36 = arith.constant 9.99999974E-6 : f32
    %103 = vector.broadcast %cst_36 : f32 to vector<1x32xf32>
    %104 = arith.addf %100, %103 : vector<1x32xf32>
    %105 = math.rsqrt %104 : vector<1x32xf32>
    %106 = vector.broadcast %105 : vector<1x32xf32> to vector<16x32xf32>
    %107 = arith.mulf %102, %106 : vector<16x32xf32>
    %108 = tpu.concatenate %62, %107 in 0 : vector<16x32xf32>, vector<16x32xf32> -> vector<32x32xf32>
    %109 = vector.broadcast %16 : vector<1x32xf32> to vector<32x32xf32>
    %110 = arith.mulf %108, %109 : vector<32x32xf32>
    %111 = vector.broadcast %17 : vector<1x32xf32> to vector<32x32xf32>
    %112 = arith.addf %110, %111 : vector<32x32xf32>
    %113 = arith.negf %112 : vector<32x32xf32>
    %114 = math.exp %113 : vector<32x32xf32>
    %cst_37 = arith.constant 1.000000e+00 : f32
    %115 = vector.broadcast %cst_37 : f32 to vector<32x32xf32>
    %116 = arith.addf %115, %114 : vector<32x32xf32>
    %117 = arith.divf %115, %116 : vector<32x32xf32>
    %118 = arith.mulf %112, %117 : vector<32x32xf32>
    %c0_38 = arith.constant 0 : index
    %c0_39 = arith.constant 0 : index
    %119 = vector.load %arg7[%c0_38, %c0_39] : memref<32x32xf32, #tpu.memory_space<vmem>>, vector<32x32xf32>
    %cst_40 = arith.constant dense<0.000000e+00> : vector<32x32xf32>
    %120 = tpu.matmul %118, %119, %cst_40 {dimension_numbers = #tpu.dot_dimension_numbers<[1], [0], [0], [1], [0, 0, 1, 1], [], []>} : vector<32x32xf32>, vector<32x32xf32>, vector<32x32xf32> -> vector<32x32xf32>
    %c0_41 = arith.constant 0 : index
    %c0_42 = arith.constant 0 : index
    %121 = vector.load %arg8[%c0_41, %c0_42] : memref<1x32xf32, #tpu.memory_space<vmem>>, vector<1x32xf32>
    %122 = vector.broadcast %121 : vector<1x32xf32> to vector<32x32xf32>
    %123 = arith.addf %120, %122 : vector<32x32xf32>
    %c0_43 = arith.constant 0 : index
    %c0_44 = arith.constant 0 : index
    %124 = vector.load %arg9[%c0_43, %c0_44] : memref<1x32xf32, #tpu.memory_space<vmem>>, vector<1x32xf32>
    %c0_45 = arith.constant 0 : index
    %c0_46 = arith.constant 0 : index
    %125 = vector.load %arg10[%c0_45, %c0_46] : memref<1x32xf32, #tpu.memory_space<vmem>>, vector<1x32xf32>
    %126 = vector.extract_strided_slice %123 {offsets = [0, 0], sizes = [16, 32], strides = [1, 1]} : vector<32x32xf32> to vector<16x32xf32>
    %cst_47 = arith.constant dense<0.000000e+00> : vector<32xf32>
    %127 = vector.multi_reduction <add>, %126, %cst_47 [0] : vector<16x32xf32> to vector<32xf32>
    %128 = vector.shape_cast %127 : vector<32xf32> to vector<1x32xf32>
    %129 = arith.mulf %126, %126 : vector<16x32xf32>
    %cst_48 = arith.constant dense<0.000000e+00> : vector<32xf32>
    %130 = vector.multi_reduction <add>, %129, %cst_48 [0] : vector<16x32xf32> to vector<32xf32>
    %131 = vector.shape_cast %130 : vector<32xf32> to vector<1x32xf32>
    %132 = tpu.concatenate %128, %131 in 0 : vector<1x32xf32>, vector<1x32xf32> -> vector<2x32xf32>
    %c31_i32_49 = arith.constant 31 : i32
    %133 = tpu.dynamic_rotate %132 by %c31_i32_49 dim 1 : vector<2x32xf32>, i32 -> vector<2x32xf32>
    %c1_i32_50 = arith.constant 1 : i32
    %134 = tpu.dynamic_rotate %132 by %c1_i32_50 dim 1 : vector<2x32xf32>, i32 -> vector<2x32xf32>
    %135 = tpu.iota {dimensions = array<i32: 1>} : vector<2x32xi32>
    %c2_i32_51 = arith.constant 2 : i32
    %c0_i32_52 = arith.constant 0 : i32
    %136 = arith.cmpi eq, %c2_i32_51, %c0_i32_52 : i32
    %c1_i32_53 = arith.constant 1 : i32
    %137 = arith.select %136, %c1_i32_53, %c2_i32_51 : i32
    %138 = vector.broadcast %137 : i32 to vector<2x32xi32>
    %139 = arith.remsi %135, %138 : vector<2x32xi32>
    %c0_i32_54 = arith.constant 0 : i32
    %140 = vector.broadcast %c0_i32_54 : i32 to vector<2x32xi32>
    %141 = arith.cmpi ne, %139, %140 : vector<2x32xi32>
    %c0_i32_55 = arith.constant 0 : i32
    %142 = vector.broadcast %c0_i32_55 : i32 to vector<2x32xi32>
    %143 = arith.cmpi slt, %139, %142 : vector<2x32xi32>
    %c0_i32_56 = arith.constant 0 : i32
    %144 = arith.cmpi slt, %137, %c0_i32_56 : i32
    %145 = vector.broadcast %144 : i1 to vector<2x32xi1>
    %146 = vector.broadcast %145 : vector<2x32xi1> to vector<2x32xi1>
    %147 = arith.xori %143, %146 : vector<2x32xi1>
    %148 = arith.andi %147, %141 : vector<2x32xi1>
    %149 = vector.broadcast %137 : i32 to vector<2x32xi32>
    %150 = arith.addi %139, %149 : vector<2x32xi32>
    %151 = arith.select %148, %150, %139 : vector<2x32xi1>, vector<2x32xi32>
    %c0_i32_57 = arith.constant 0 : i32
    %152 = vector.broadcast %c0_i32_57 : i32 to vector<2x32xi32>
    %153 = arith.cmpi eq, %151, %152 : vector<2x32xi32>
    %154 = arith.select %153, %133, %134 : vector<2x32xi1>, vector<2x32xf32>
    %155 = arith.addf %132, %154 : vector<2x32xf32>
    %156 = vector.extract_strided_slice %155 {offsets = [0, 0], sizes = [1, 32], strides = [1, 1]} : vector<2x32xf32> to vector<1x32xf32>
    %cst_58 = arith.constant 3.200000e+01 : f32
    %157 = vector.broadcast %cst_58 : f32 to vector<1x32xf32>
    %158 = arith.divf %156, %157 : vector<1x32xf32>
    %159 = vector.extract_strided_slice %155 {offsets = [1, 0], sizes = [1, 32], strides = [1, 1]} : vector<2x32xf32> to vector<1x32xf32>
    %cst_59 = arith.constant 3.200000e+01 : f32
    %160 = vector.broadcast %cst_59 : f32 to vector<1x32xf32>
    %161 = arith.divf %159, %160 : vector<1x32xf32>
    %162 = arith.mulf %158, %158 : vector<1x32xf32>
    %163 = arith.subf %161, %162 : vector<1x32xf32>
    %164 = vector.broadcast %158 : vector<1x32xf32> to vector<16x32xf32>
    %165 = arith.subf %126, %164 : vector<16x32xf32>
    %cst_60 = arith.constant 9.99999974E-6 : f32
    %166 = vector.broadcast %cst_60 : f32 to vector<1x32xf32>
    %167 = arith.addf %163, %166 : vector<1x32xf32>
    %168 = math.rsqrt %167 : vector<1x32xf32>
    %169 = vector.broadcast %168 : vector<1x32xf32> to vector<16x32xf32>
    %170 = arith.mulf %165, %169 : vector<16x32xf32>
    %171 = vector.extract_strided_slice %123 {offsets = [16, 0], sizes = [16, 32], strides = [1, 1]} : vector<32x32xf32> to vector<16x32xf32>
    %cst_61 = arith.constant dense<0.000000e+00> : vector<32xf32>
    %172 = vector.multi_reduction <add>, %171, %cst_61 [0] : vector<16x32xf32> to vector<32xf32>
    %173 = vector.shape_cast %172 : vector<32xf32> to vector<1x32xf32>
    %174 = arith.mulf %171, %171 : vector<16x32xf32>
    %cst_62 = arith.constant dense<0.000000e+00> : vector<32xf32>
    %175 = vector.multi_reduction <add>, %174, %cst_62 [0] : vector<16x32xf32> to vector<32xf32>
    %176 = vector.shape_cast %175 : vector<32xf32> to vector<1x32xf32>
    %177 = tpu.concatenate %173, %176 in 0 : vector<1x32xf32>, vector<1x32xf32> -> vector<2x32xf32>
    %c31_i32_63 = arith.constant 31 : i32
    %178 = tpu.dynamic_rotate %177 by %c31_i32_63 dim 1 : vector<2x32xf32>, i32 -> vector<2x32xf32>
    %c1_i32_64 = arith.constant 1 : i32
    %179 = tpu.dynamic_rotate %177 by %c1_i32_64 dim 1 : vector<2x32xf32>, i32 -> vector<2x32xf32>
    %180 = tpu.iota {dimensions = array<i32: 1>} : vector<2x32xi32>
    %c2_i32_65 = arith.constant 2 : i32
    %c0_i32_66 = arith.constant 0 : i32
    %181 = arith.cmpi eq, %c2_i32_65, %c0_i32_66 : i32
    %c1_i32_67 = arith.constant 1 : i32
    %182 = arith.select %181, %c1_i32_67, %c2_i32_65 : i32
    %183 = vector.broadcast %182 : i32 to vector<2x32xi32>
    %184 = arith.remsi %180, %183 : vector<2x32xi32>
    %c0_i32_68 = arith.constant 0 : i32
    %185 = vector.broadcast %c0_i32_68 : i32 to vector<2x32xi32>
    %186 = arith.cmpi ne, %184, %185 : vector<2x32xi32>
    %c0_i32_69 = arith.constant 0 : i32
    %187 = vector.broadcast %c0_i32_69 : i32 to vector<2x32xi32>
    %188 = arith.cmpi slt, %184, %187 : vector<2x32xi32>
    %c0_i32_70 = arith.constant 0 : i32
    %189 = arith.cmpi slt, %182, %c0_i32_70 : i32
    %190 = vector.broadcast %189 : i1 to vector<2x32xi1>
    %191 = vector.broadcast %190 : vector<2x32xi1> to vector<2x32xi1>
    %192 = arith.xori %188, %191 : vector<2x32xi1>
    %193 = arith.andi %192, %186 : vector<2x32xi1>
    %194 = vector.broadcast %182 : i32 to vector<2x32xi32>
    %195 = arith.addi %184, %194 : vector<2x32xi32>
    %196 = arith.select %193, %195, %184 : vector<2x32xi1>, vector<2x32xi32>
    %c0_i32_71 = arith.constant 0 : i32
    %197 = vector.broadcast %c0_i32_71 : i32 to vector<2x32xi32>
    %198 = arith.cmpi eq, %196, %197 : vector<2x32xi32>
    %199 = arith.select %198, %178, %179 : vector<2x32xi1>, vector<2x32xf32>
    %200 = arith.addf %177, %199 : vector<2x32xf32>
    %201 = vector.extract_strided_slice %200 {offsets = [0, 0], sizes = [1, 32], strides = [1, 1]} : vector<2x32xf32> to vector<1x32xf32>
    %cst_72 = arith.constant 3.200000e+01 : f32
    %202 = vector.broadcast %cst_72 : f32 to vector<1x32xf32>
    %203 = arith.divf %201, %202 : vector<1x32xf32>
    %204 = vector.extract_strided_slice %200 {offsets = [1, 0], sizes = [1, 32], strides = [1, 1]} : vector<2x32xf32> to vector<1x32xf32>
    %cst_73 = arith.constant 3.200000e+01 : f32
    %205 = vector.broadcast %cst_73 : f32 to vector<1x32xf32>
    %206 = arith.divf %204, %205 : vector<1x32xf32>
    %207 = arith.mulf %203, %203 : vector<1x32xf32>
    %208 = arith.subf %206, %207 : vector<1x32xf32>
    %209 = vector.broadcast %203 : vector<1x32xf32> to vector<16x32xf32>
    %210 = arith.subf %171, %209 : vector<16x32xf32>
    %cst_74 = arith.constant 9.99999974E-6 : f32
    %211 = vector.broadcast %cst_74 : f32 to vector<1x32xf32>
    %212 = arith.addf %208, %211 : vector<1x32xf32>
    %213 = math.rsqrt %212 : vector<1x32xf32>
    %214 = vector.broadcast %213 : vector<1x32xf32> to vector<16x32xf32>
    %215 = arith.mulf %210, %214 : vector<16x32xf32>
    %216 = tpu.concatenate %170, %215 in 0 : vector<16x32xf32>, vector<16x32xf32> -> vector<32x32xf32>
    %217 = vector.broadcast %124 : vector<1x32xf32> to vector<32x32xf32>
    %218 = arith.mulf %216, %217 : vector<32x32xf32>
    %219 = vector.broadcast %125 : vector<1x32xf32> to vector<32x32xf32>
    %220 = arith.addf %218, %219 : vector<32x32xf32>
    %221 = vector.extract_strided_slice %220 {offsets = [0, 0], sizes = [16, 32], strides = [1, 1]} : vector<32x32xf32> to vector<16x32xf32>
    %222 = vector.extract_strided_slice %14 {offsets = [0, 0], sizes = [1, 32], strides = [1, 1]} : vector<2x32xf32> to vector<1x32xf32>
    %cst_75 = arith.constant 1.000000e+00 : f32
    %223 = vector.broadcast %cst_75 : f32 to vector<1x32xf32>
    %224 = arith.addf %223, %222 : vector<1x32xf32>
    %225 = vector.broadcast %224 : vector<1x32xf32> to vector<16x32xf32>
    %226 = arith.mulf %221, %225 : vector<16x32xf32>
    %227 = vector.extract_strided_slice %15 {offsets = [0, 0], sizes = [1, 32], strides = [1, 1]} : vector<2x32xf32> to vector<1x32xf32>
    %228 = vector.broadcast %227 : vector<1x32xf32> to vector<16x32xf32>
    %229 = arith.addf %226, %228 : vector<16x32xf32>
    %230 = vector.extract_strided_slice %220 {offsets = [16, 0], sizes = [16, 32], strides = [1, 1]} : vector<32x32xf32> to vector<16x32xf32>
    %231 = vector.extract_strided_slice %14 {offsets = [1, 0], sizes = [1, 32], strides = [1, 1]} : vector<2x32xf32> to vector<1x32xf32>
    %cst_76 = arith.constant 1.000000e+00 : f32
    %232 = vector.broadcast %cst_76 : f32 to vector<1x32xf32>
    %233 = arith.addf %232, %231 : vector<1x32xf32>
    %234 = vector.broadcast %233 : vector<1x32xf32> to vector<16x32xf32>
    %235 = arith.mulf %230, %234 : vector<16x32xf32>
    %236 = vector.extract_strided_slice %15 {offsets = [1, 0], sizes = [1, 32], strides = [1, 1]} : vector<2x32xf32> to vector<1x32xf32>
    %237 = vector.broadcast %236 : vector<1x32xf32> to vector<16x32xf32>
    %238 = arith.addf %235, %237 : vector<16x32xf32>
    %239 = tpu.concatenate %229, %238 in 0 : vector<16x32xf32>, vector<16x32xf32> -> vector<32x32xf32>
    %240 = arith.negf %239 : vector<32x32xf32>
    %241 = math.exp %240 : vector<32x32xf32>
    %cst_77 = arith.constant 1.000000e+00 : f32
    %242 = vector.broadcast %cst_77 : f32 to vector<32x32xf32>
    %243 = arith.addf %242, %241 : vector<32x32xf32>
    %244 = arith.divf %242, %243 : vector<32x32xf32>
    %245 = arith.mulf %239, %244 : vector<32x32xf32>
    %246 = tpu.iota {dimensions = array<i32: 0>} : vector<32x32xi32>
    %c16_i32 = arith.constant 16 : i32
    %c0_i32_78 = arith.constant 0 : i32
    %247 = arith.cmpi eq, %c16_i32, %c0_i32_78 : i32
    %c1_i32_79 = arith.constant 1 : i32
    %248 = arith.select %247, %c1_i32_79, %c16_i32 : i32
    %249 = vector.broadcast %248 : i32 to vector<32x32xi32>
    %250 = arith.remsi %246, %249 : vector<32x32xi32>
    %c0_i32_80 = arith.constant 0 : i32
    %251 = vector.broadcast %c0_i32_80 : i32 to vector<32x32xi32>
    %252 = arith.cmpi ne, %250, %251 : vector<32x32xi32>
    %c0_i32_81 = arith.constant 0 : i32
    %253 = vector.broadcast %c0_i32_81 : i32 to vector<32x32xi32>
    %254 = arith.cmpi slt, %250, %253 : vector<32x32xi32>
    %c0_i32_82 = arith.constant 0 : i32
    %255 = arith.cmpi slt, %248, %c0_i32_82 : i32
    %256 = vector.broadcast %255 : i1 to vector<32x32xi1>
    %257 = vector.broadcast %256 : vector<32x32xi1> to vector<32x32xi1>
    %258 = arith.xori %254, %257 : vector<32x32xi1>
    %259 = arith.andi %258, %252 : vector<32x32xi1>
    %260 = vector.broadcast %248 : i32 to vector<32x32xi32>
    %261 = arith.addi %250, %260 : vector<32x32xi32>
    %262 = arith.select %259, %261, %250 : vector<32x32xi1>, vector<32x32xi32>
    %c0_i32_83 = arith.constant 0 : i32
    %263 = vector.broadcast %c0_i32_83 : i32 to vector<32x32xi32>
    %264 = arith.cmpi eq, %262, %263 : vector<32x32xi32>
    %c1_i32_84 = arith.constant 1 : i32
    %265 = tpu.dynamic_rotate %245 by %c1_i32_84 dim 0 : vector<32x32xf32>, i32 -> vector<32x32xf32>
    %cst_85 = arith.constant 0.000000e+00 : f32
    %266 = vector.broadcast %cst_85 : f32 to vector<32x32xf32>
    %267 = arith.select %264, %266, %265 : vector<32x32xi1>, vector<32x32xf32>
    %c15_i32 = arith.constant 15 : i32
    %268 = vector.broadcast %c15_i32 : i32 to vector<32x32xi32>
    %269 = arith.cmpi eq, %262, %268 : vector<32x32xi32>
    %c31_i32_86 = arith.constant 31 : i32
    %270 = tpu.dynamic_rotate %245 by %c31_i32_86 dim 0 : vector<32x32xf32>, i32 -> vector<32x32xf32>
    %cst_87 = arith.constant 0.000000e+00 : f32
    %271 = vector.broadcast %cst_87 : f32 to vector<32x32xf32>
    %272 = arith.select %269, %271, %270 : vector<32x32xi1>, vector<32x32xf32>
    %273 = tpu.concatenate %267, %245, %272 in 1 : vector<32x32xf32>, vector<32x32xf32>, vector<32x32xf32> -> vector<32x96xf32>
    %c0_88 = arith.constant 0 : index
    %c0_89 = arith.constant 0 : index
    %274 = vector.load %arg11[%c0_88, %c0_89] : memref<96x32xf32, #tpu.memory_space<vmem>>, vector<96x32xf32>
    %cst_90 = arith.constant dense<0.000000e+00> : vector<32x32xf32>
    %275 = tpu.matmul %273, %274, %cst_90 {dimension_numbers = #tpu.dot_dimension_numbers<[1], [0], [0], [1], [0, 0, 1, 1], [], []>} : vector<32x96xf32>, vector<96x32xf32>, vector<32x32xf32> -> vector<32x32xf32>
    %276 = arith.addf %1, %275 : vector<32x32xf32>
    %c0_91 = arith.constant 0 : index
    %c0_92 = arith.constant 0 : index
    %277 = vector.load %arg12[%c0_91, %c0_92] : memref<1x32xf32, #tpu.memory_space<vmem>>, vector<1x32xf32>
    %278 = vector.broadcast %277 : vector<1x32xf32> to vector<32x32xf32>
    %279 = arith.addf %276, %278 : vector<32x32xf32>
    %c0_93 = arith.constant 0 : index
    %c0_94 = arith.constant 0 : index
    %280 = vector.load %arg13[%c0_93, %c0_94] : memref<1x32xf32, #tpu.memory_space<vmem>>, vector<1x32xf32>
    %c0_95 = arith.constant 0 : index
    %c0_96 = arith.constant 0 : index
    %281 = vector.load %arg14[%c0_95, %c0_96] : memref<1x32xf32, #tpu.memory_space<vmem>>, vector<1x32xf32>
    %282 = vector.extract_strided_slice %279 {offsets = [0, 0], sizes = [16, 32], strides = [1, 1]} : vector<32x32xf32> to vector<16x32xf32>
    %cst_97 = arith.constant dense<0.000000e+00> : vector<32xf32>
    %283 = vector.multi_reduction <add>, %282, %cst_97 [0] : vector<16x32xf32> to vector<32xf32>
    %284 = vector.shape_cast %283 : vector<32xf32> to vector<1x32xf32>
    %285 = arith.mulf %282, %282 : vector<16x32xf32>
    %cst_98 = arith.constant dense<0.000000e+00> : vector<32xf32>
    %286 = vector.multi_reduction <add>, %285, %cst_98 [0] : vector<16x32xf32> to vector<32xf32>
    %287 = vector.shape_cast %286 : vector<32xf32> to vector<1x32xf32>
    %288 = tpu.concatenate %284, %287 in 0 : vector<1x32xf32>, vector<1x32xf32> -> vector<2x32xf32>
    %c31_i32_99 = arith.constant 31 : i32
    %289 = tpu.dynamic_rotate %288 by %c31_i32_99 dim 1 : vector<2x32xf32>, i32 -> vector<2x32xf32>
    %c1_i32_100 = arith.constant 1 : i32
    %290 = tpu.dynamic_rotate %288 by %c1_i32_100 dim 1 : vector<2x32xf32>, i32 -> vector<2x32xf32>
    %291 = tpu.iota {dimensions = array<i32: 1>} : vector<2x32xi32>
    %c2_i32_101 = arith.constant 2 : i32
    %c0_i32_102 = arith.constant 0 : i32
    %292 = arith.cmpi eq, %c2_i32_101, %c0_i32_102 : i32
    %c1_i32_103 = arith.constant 1 : i32
    %293 = arith.select %292, %c1_i32_103, %c2_i32_101 : i32
    %294 = vector.broadcast %293 : i32 to vector<2x32xi32>
    %295 = arith.remsi %291, %294 : vector<2x32xi32>
    %c0_i32_104 = arith.constant 0 : i32
    %296 = vector.broadcast %c0_i32_104 : i32 to vector<2x32xi32>
    %297 = arith.cmpi ne, %295, %296 : vector<2x32xi32>
    %c0_i32_105 = arith.constant 0 : i32
    %298 = vector.broadcast %c0_i32_105 : i32 to vector<2x32xi32>
    %299 = arith.cmpi slt, %295, %298 : vector<2x32xi32>
    %c0_i32_106 = arith.constant 0 : i32
    %300 = arith.cmpi slt, %293, %c0_i32_106 : i32
    %301 = vector.broadcast %300 : i1 to vector<2x32xi1>
    %302 = vector.broadcast %301 : vector<2x32xi1> to vector<2x32xi1>
    %303 = arith.xori %299, %302 : vector<2x32xi1>
    %304 = arith.andi %303, %297 : vector<2x32xi1>
    %305 = vector.broadcast %293 : i32 to vector<2x32xi32>
    %306 = arith.addi %295, %305 : vector<2x32xi32>
    %307 = arith.select %304, %306, %295 : vector<2x32xi1>, vector<2x32xi32>
    %c0_i32_107 = arith.constant 0 : i32
    %308 = vector.broadcast %c0_i32_107 : i32 to vector<2x32xi32>
    %309 = arith.cmpi eq, %307, %308 : vector<2x32xi32>
    %310 = arith.select %309, %289, %290 : vector<2x32xi1>, vector<2x32xf32>
    %311 = arith.addf %288, %310 : vector<2x32xf32>
    %312 = vector.extract_strided_slice %311 {offsets = [0, 0], sizes = [1, 32], strides = [1, 1]} : vector<2x32xf32> to vector<1x32xf32>
    %cst_108 = arith.constant 3.200000e+01 : f32
    %313 = vector.broadcast %cst_108 : f32 to vector<1x32xf32>
    %314 = arith.divf %312, %313 : vector<1x32xf32>
    %315 = vector.extract_strided_slice %311 {offsets = [1, 0], sizes = [1, 32], strides = [1, 1]} : vector<2x32xf32> to vector<1x32xf32>
    %cst_109 = arith.constant 3.200000e+01 : f32
    %316 = vector.broadcast %cst_109 : f32 to vector<1x32xf32>
    %317 = arith.divf %315, %316 : vector<1x32xf32>
    %318 = arith.mulf %314, %314 : vector<1x32xf32>
    %319 = arith.subf %317, %318 : vector<1x32xf32>
    %320 = vector.broadcast %314 : vector<1x32xf32> to vector<16x32xf32>
    %321 = arith.subf %282, %320 : vector<16x32xf32>
    %cst_110 = arith.constant 9.99999974E-6 : f32
    %322 = vector.broadcast %cst_110 : f32 to vector<1x32xf32>
    %323 = arith.addf %319, %322 : vector<1x32xf32>
    %324 = math.rsqrt %323 : vector<1x32xf32>
    %325 = vector.broadcast %324 : vector<1x32xf32> to vector<16x32xf32>
    %326 = arith.mulf %321, %325 : vector<16x32xf32>
    %327 = vector.extract_strided_slice %279 {offsets = [16, 0], sizes = [16, 32], strides = [1, 1]} : vector<32x32xf32> to vector<16x32xf32>
    %cst_111 = arith.constant dense<0.000000e+00> : vector<32xf32>
    %328 = vector.multi_reduction <add>, %327, %cst_111 [0] : vector<16x32xf32> to vector<32xf32>
    %329 = vector.shape_cast %328 : vector<32xf32> to vector<1x32xf32>
    %330 = arith.mulf %327, %327 : vector<16x32xf32>
    %cst_112 = arith.constant dense<0.000000e+00> : vector<32xf32>
    %331 = vector.multi_reduction <add>, %330, %cst_112 [0] : vector<16x32xf32> to vector<32xf32>
    %332 = vector.shape_cast %331 : vector<32xf32> to vector<1x32xf32>
    %333 = tpu.concatenate %329, %332 in 0 : vector<1x32xf32>, vector<1x32xf32> -> vector<2x32xf32>
    %c31_i32_113 = arith.constant 31 : i32
    %334 = tpu.dynamic_rotate %333 by %c31_i32_113 dim 1 : vector<2x32xf32>, i32 -> vector<2x32xf32>
    %c1_i32_114 = arith.constant 1 : i32
    %335 = tpu.dynamic_rotate %333 by %c1_i32_114 dim 1 : vector<2x32xf32>, i32 -> vector<2x32xf32>
    %336 = tpu.iota {dimensions = array<i32: 1>} : vector<2x32xi32>
    %c2_i32_115 = arith.constant 2 : i32
    %c0_i32_116 = arith.constant 0 : i32
    %337 = arith.cmpi eq, %c2_i32_115, %c0_i32_116 : i32
    %c1_i32_117 = arith.constant 1 : i32
    %338 = arith.select %337, %c1_i32_117, %c2_i32_115 : i32
    %339 = vector.broadcast %338 : i32 to vector<2x32xi32>
    %340 = arith.remsi %336, %339 : vector<2x32xi32>
    %c0_i32_118 = arith.constant 0 : i32
    %341 = vector.broadcast %c0_i32_118 : i32 to vector<2x32xi32>
    %342 = arith.cmpi ne, %340, %341 : vector<2x32xi32>
    %c0_i32_119 = arith.constant 0 : i32
    %343 = vector.broadcast %c0_i32_119 : i32 to vector<2x32xi32>
    %344 = arith.cmpi slt, %340, %343 : vector<2x32xi32>
    %c0_i32_120 = arith.constant 0 : i32
    %345 = arith.cmpi slt, %338, %c0_i32_120 : i32
    %346 = vector.broadcast %345 : i1 to vector<2x32xi1>
    %347 = vector.broadcast %346 : vector<2x32xi1> to vector<2x32xi1>
    %348 = arith.xori %344, %347 : vector<2x32xi1>
    %349 = arith.andi %348, %342 : vector<2x32xi1>
    %350 = vector.broadcast %338 : i32 to vector<2x32xi32>
    %351 = arith.addi %340, %350 : vector<2x32xi32>
    %352 = arith.select %349, %351, %340 : vector<2x32xi1>, vector<2x32xi32>
    %c0_i32_121 = arith.constant 0 : i32
    %353 = vector.broadcast %c0_i32_121 : i32 to vector<2x32xi32>
    %354 = arith.cmpi eq, %352, %353 : vector<2x32xi32>
    %355 = arith.select %354, %334, %335 : vector<2x32xi1>, vector<2x32xf32>
    %356 = arith.addf %333, %355 : vector<2x32xf32>
    %357 = vector.extract_strided_slice %356 {offsets = [0, 0], sizes = [1, 32], strides = [1, 1]} : vector<2x32xf32> to vector<1x32xf32>
    %cst_122 = arith.constant 3.200000e+01 : f32
    %358 = vector.broadcast %cst_122 : f32 to vector<1x32xf32>
    %359 = arith.divf %357, %358 : vector<1x32xf32>
    %360 = vector.extract_strided_slice %356 {offsets = [1, 0], sizes = [1, 32], strides = [1, 1]} : vector<2x32xf32> to vector<1x32xf32>
    %cst_123 = arith.constant 3.200000e+01 : f32
    %361 = vector.broadcast %cst_123 : f32 to vector<1x32xf32>
    %362 = arith.divf %360, %361 : vector<1x32xf32>
    %363 = arith.mulf %359, %359 : vector<1x32xf32>
    %364 = arith.subf %362, %363 : vector<1x32xf32>
    %365 = vector.broadcast %359 : vector<1x32xf32> to vector<16x32xf32>
    %366 = arith.subf %327, %365 : vector<16x32xf32>
    %cst_124 = arith.constant 9.99999974E-6 : f32
    %367 = vector.broadcast %cst_124 : f32 to vector<1x32xf32>
    %368 = arith.addf %364, %367 : vector<1x32xf32>
    %369 = math.rsqrt %368 : vector<1x32xf32>
    %370 = vector.broadcast %369 : vector<1x32xf32> to vector<16x32xf32>
    %371 = arith.mulf %366, %370 : vector<16x32xf32>
    %372 = tpu.concatenate %326, %371 in 0 : vector<16x32xf32>, vector<16x32xf32> -> vector<32x32xf32>
    %373 = vector.broadcast %280 : vector<1x32xf32> to vector<32x32xf32>
    %374 = arith.mulf %372, %373 : vector<32x32xf32>
    %375 = vector.broadcast %281 : vector<1x32xf32> to vector<32x32xf32>
    %376 = arith.addf %374, %375 : vector<32x32xf32>
    %c0_125 = arith.constant 0 : index
    %c0_126 = arith.constant 0 : index
    %377 = vector.load %arg15[%c0_125, %c0_126] : memref<32x96xf32, #tpu.memory_space<vmem>>, vector<32x96xf32>
    %cst_127 = arith.constant dense<0.000000e+00> : vector<32x96xf32>
    %378 = tpu.matmul %376, %377, %cst_127 {dimension_numbers = #tpu.dot_dimension_numbers<[1], [0], [0], [1], [0, 0, 1, 1], [], []>} : vector<32x32xf32>, vector<32x96xf32>, vector<32x96xf32> -> vector<32x96xf32>
    %c0_128 = arith.constant 0 : index
    %c0_129 = arith.constant 0 : index
    %379 = vector.load %arg16[%c0_128, %c0_129] : memref<1x96xf32, #tpu.memory_space<vmem>>, vector<1x96xf32>
    %380 = vector.broadcast %379 : vector<1x96xf32> to vector<32x96xf32>
    %381 = arith.addf %378, %380 : vector<32x96xf32>
    %c0_130 = arith.constant 0 : index
    %c0_131 = arith.constant 0 : index
    %382 = vector.load %arg18[%c0_130, %c0_131] : memref<64x32xf32, #tpu.memory_space<vmem>>, vector<64x32xf32>
    %c0_132 = arith.constant 0 : index
    %c0_133 = arith.constant 0 : index
    %383 = vector.load %arg17[%c0_132, %c0_133] : memref<64x16xf32, #tpu.memory_space<vmem>>, vector<64x16xf32>
    %384 = vector.extract_strided_slice %381 {offsets = [0, 0], sizes = [16, 32], strides = [1, 1]} : vector<32x96xf32> to vector<16x32xf32>
    %385 = vector.extract_strided_slice %381 {offsets = [0, 32], sizes = [16, 32], strides = [1, 1]} : vector<32x96xf32> to vector<16x32xf32>
    %386 = vector.extract_strided_slice %381 {offsets = [0, 64], sizes = [16, 32], strides = [1, 1]} : vector<32x96xf32> to vector<16x32xf32>
    %387 = tpu.concatenate %384, %384, %384, %384 in 0 : vector<16x32xf32>, vector<16x32xf32>, vector<16x32xf32>, vector<16x32xf32> -> vector<64x32xf32>
    %388 = arith.mulf %387, %382 : vector<64x32xf32>
    %cst_134 = arith.constant dense<0.000000e+00> : vector<64x16xf32>
    %389 = tpu.matmul %388, %385, %cst_134 {dimension_numbers = #tpu.dot_dimension_numbers<[1], [1], [0], [0], [0, 0, 1, 0], [], []>} : vector<64x32xf32>, vector<16x32xf32>, vector<64x16xf32> -> vector<64x16xf32>
    %390 = arith.addf %389, %383 : vector<64x16xf32>
    %cst_135 = arith.constant dense<0xFF800000> : vector<64xf32>
    %391 = vector.multi_reduction <maximumf>, %390, %cst_135 [1] : vector<64x16xf32> to vector<64xf32>
    %392 = vector.shape_cast %391 : vector<64xf32> to vector<64x1xf32>
    %393 = vector.broadcast %392 : vector<64x1xf32> to vector<64x16xf32>
    %394 = arith.subf %390, %393 : vector<64x16xf32>
    %395 = math.exp %394 : vector<64x16xf32>
    %cst_136 = arith.constant dense<0.000000e+00> : vector<64xf32>
    %396 = vector.multi_reduction <add>, %395, %cst_136 [1] : vector<64x16xf32> to vector<64xf32>
    %397 = vector.shape_cast %396 : vector<64xf32> to vector<64x1xf32>
    %398 = vector.broadcast %397 : vector<64x1xf32> to vector<64x16xf32>
    %399 = arith.divf %395, %398 : vector<64x16xf32>
    %cst_137 = arith.constant dense<0.000000e+00> : vector<64x32xf32>
    %400 = tpu.matmul %399, %386, %cst_137 {dimension_numbers = #tpu.dot_dimension_numbers<[1], [0], [0], [1], [0, 0, 1, 1], [], []>} : vector<64x16xf32>, vector<16x32xf32>, vector<64x32xf32> -> vector<64x32xf32>
    %401 = arith.mulf %400, %382 : vector<64x32xf32>
    %402 = vector.extract_strided_slice %401 {offsets = [0, 0], sizes = [16, 32], strides = [1, 1]} : vector<64x32xf32> to vector<16x32xf32>
    %403 = vector.extract_strided_slice %401 {offsets = [16, 0], sizes = [16, 32], strides = [1, 1]} : vector<64x32xf32> to vector<16x32xf32>
    %404 = arith.addf %402, %403 : vector<16x32xf32>
    %405 = vector.extract_strided_slice %401 {offsets = [32, 0], sizes = [16, 32], strides = [1, 1]} : vector<64x32xf32> to vector<16x32xf32>
    %406 = arith.addf %404, %405 : vector<16x32xf32>
    %407 = vector.extract_strided_slice %401 {offsets = [48, 0], sizes = [16, 32], strides = [1, 1]} : vector<64x32xf32> to vector<16x32xf32>
    %408 = arith.addf %406, %407 : vector<16x32xf32>
    %409 = vector.extract_strided_slice %381 {offsets = [16, 0], sizes = [16, 32], strides = [1, 1]} : vector<32x96xf32> to vector<16x32xf32>
    %410 = vector.extract_strided_slice %381 {offsets = [16, 32], sizes = [16, 32], strides = [1, 1]} : vector<32x96xf32> to vector<16x32xf32>
    %411 = vector.extract_strided_slice %381 {offsets = [16, 64], sizes = [16, 32], strides = [1, 1]} : vector<32x96xf32> to vector<16x32xf32>
    %412 = tpu.concatenate %409, %409, %409, %409 in 0 : vector<16x32xf32>, vector<16x32xf32>, vector<16x32xf32>, vector<16x32xf32> -> vector<64x32xf32>
    %413 = arith.mulf %412, %382 : vector<64x32xf32>
    %cst_138 = arith.constant dense<0.000000e+00> : vector<64x16xf32>
    %414 = tpu.matmul %413, %410, %cst_138 {dimension_numbers = #tpu.dot_dimension_numbers<[1], [1], [0], [0], [0, 0, 1, 0], [], []>} : vector<64x32xf32>, vector<16x32xf32>, vector<64x16xf32> -> vector<64x16xf32>
    %415 = arith.addf %414, %383 : vector<64x16xf32>
    %cst_139 = arith.constant dense<0xFF800000> : vector<64xf32>
    %416 = vector.multi_reduction <maximumf>, %415, %cst_139 [1] : vector<64x16xf32> to vector<64xf32>
    %417 = vector.shape_cast %416 : vector<64xf32> to vector<64x1xf32>
    %418 = vector.broadcast %417 : vector<64x1xf32> to vector<64x16xf32>
    %419 = arith.subf %415, %418 : vector<64x16xf32>
    %420 = math.exp %419 : vector<64x16xf32>
    %cst_140 = arith.constant dense<0.000000e+00> : vector<64xf32>
    %421 = vector.multi_reduction <add>, %420, %cst_140 [1] : vector<64x16xf32> to vector<64xf32>
    %422 = vector.shape_cast %421 : vector<64xf32> to vector<64x1xf32>
    %423 = vector.broadcast %422 : vector<64x1xf32> to vector<64x16xf32>
    %424 = arith.divf %420, %423 : vector<64x16xf32>
    %cst_141 = arith.constant dense<0.000000e+00> : vector<64x32xf32>
    %425 = tpu.matmul %424, %411, %cst_141 {dimension_numbers = #tpu.dot_dimension_numbers<[1], [0], [0], [1], [0, 0, 1, 1], [], []>} : vector<64x16xf32>, vector<16x32xf32>, vector<64x32xf32> -> vector<64x32xf32>
    %426 = arith.mulf %425, %382 : vector<64x32xf32>
    %427 = vector.extract_strided_slice %426 {offsets = [0, 0], sizes = [16, 32], strides = [1, 1]} : vector<64x32xf32> to vector<16x32xf32>
    %428 = vector.extract_strided_slice %426 {offsets = [16, 0], sizes = [16, 32], strides = [1, 1]} : vector<64x32xf32> to vector<16x32xf32>
    %429 = arith.addf %427, %428 : vector<16x32xf32>
    %430 = vector.extract_strided_slice %426 {offsets = [32, 0], sizes = [16, 32], strides = [1, 1]} : vector<64x32xf32> to vector<16x32xf32>
    %431 = arith.addf %429, %430 : vector<16x32xf32>
    %432 = vector.extract_strided_slice %426 {offsets = [48, 0], sizes = [16, 32], strides = [1, 1]} : vector<64x32xf32> to vector<16x32xf32>
    %433 = arith.addf %431, %432 : vector<16x32xf32>
    %434 = tpu.concatenate %408, %433 in 0 : vector<16x32xf32>, vector<16x32xf32> -> vector<32x32xf32>
    %c0_142 = arith.constant 0 : index
    %c0_143 = arith.constant 0 : index
    %435 = vector.load %arg19[%c0_142, %c0_143] : memref<32x32xf32, #tpu.memory_space<vmem>>, vector<32x32xf32>
    %cst_144 = arith.constant dense<0.000000e+00> : vector<32x32xf32>
    %436 = tpu.matmul %434, %435, %cst_144 {dimension_numbers = #tpu.dot_dimension_numbers<[1], [0], [0], [1], [0, 0, 1, 1], [], []>} : vector<32x32xf32>, vector<32x32xf32>, vector<32x32xf32> -> vector<32x32xf32>
    %437 = arith.addf %279, %436 : vector<32x32xf32>
    %c0_145 = arith.constant 0 : index
    %c0_146 = arith.constant 0 : index
    %438 = vector.load %arg20[%c0_145, %c0_146] : memref<1x32xf32, #tpu.memory_space<vmem>>, vector<1x32xf32>
    %439 = vector.broadcast %438 : vector<1x32xf32> to vector<32x32xf32>
    %440 = arith.addf %437, %439 : vector<32x32xf32>
    %441 = vector.shape_cast %440 : vector<32x32xf32> to vector<2x16x32xf32>
    %c0_147 = arith.constant 0 : index
    %c0_148 = arith.constant 0 : index
    %c0_149 = arith.constant 0 : index
    %442 = vector.load %arg23[%c0_147, %c0_148, %c0_149] : memref<2x16x32xf32, #tpu.memory_space<vmem>>, vector<2x16x32xf32>
    tpu.vector_store %arg23[%c0_147, %c0_148, %c0_149], %441 {strides = array<i32>} : memref<2x16x32xf32, #tpu.memory_space<vmem>>, vector<2x16x32xf32>,
    return
  }
  func.func @transform_0(%arg0: i32) -> (i32, i32, i32) {
    %c0_i32 = arith.constant 0 : i32
    %c0_i32_0 = arith.constant 0 : i32
    %c0_i32_1 = arith.constant 0 : i32
    return %arg0, %c0_i32, %c0_i32_0 : i32, i32, i32
  }
  func.func @transform_1(%arg0: i32) -> (i32, i32) {
    %c0_i32 = arith.constant 0 : i32
    %c0_i32_0 = arith.constant 0 : i32
    return %arg0, %c0_i32 : i32, i32
  }
  func.func @transform_2(%arg0: i32) -> (i32, i32) {
    %c0_i32 = arith.constant 0 : i32
    %c0_i32_0 = arith.constant 0 : i32
    %c0_i32_1 = arith.constant 0 : i32
    return %c0_i32, %c0_i32_0 : i32, i32
  }
  func.func @transform_3(%arg0: i32) -> (i32, i32) {
    %c0_i32 = arith.constant 0 : i32
    %c0_i32_0 = arith.constant 0 : i32
    %c0_i32_1 = arith.constant 0 : i32
    return %c0_i32, %c0_i32_0 : i32, i32
  }
  func.func @transform_4(%arg0: i32) -> (i32, i32) {
    %c0_i32 = arith.constant 0 : i32
    %c0_i32_0 = arith.constant 0 : i32
    %c0_i32_1 = arith.constant 0 : i32
    return %c0_i32, %c0_i32_0 : i32, i32
  }
  func.func @transform_5(%arg0: i32) -> (i32, i32) {
    %c0_i32 = arith.constant 0 : i32
    %c0_i32_0 = arith.constant 0 : i32
    %c0_i32_1 = arith.constant 0 : i32
    return %c0_i32, %c0_i32_0 : i32, i32
  }
  func.func @transform_6(%arg0: i32) -> (i32, i32) {
    %c0_i32 = arith.constant 0 : i32
    %c0_i32_0 = arith.constant 0 : i32
    %c0_i32_1 = arith.constant 0 : i32
    return %c0_i32, %c0_i32_0 : i32, i32
  }
  func.func @transform_7(%arg0: i32) -> (i32, i32) {
    %c0_i32 = arith.constant 0 : i32
    %c0_i32_0 = arith.constant 0 : i32
    %c0_i32_1 = arith.constant 0 : i32
    return %c0_i32, %c0_i32_0 : i32, i32
  }
  func.func @transform_8(%arg0: i32) -> (i32, i32) {
    %c0_i32 = arith.constant 0 : i32
    %c0_i32_0 = arith.constant 0 : i32
    %c0_i32_1 = arith.constant 0 : i32
    return %c0_i32, %c0_i32_0 : i32, i32
  }
  func.func @transform_9(%arg0: i32) -> (i32, i32) {
    %c0_i32 = arith.constant 0 : i32
    %c0_i32_0 = arith.constant 0 : i32
    %c0_i32_1 = arith.constant 0 : i32
    return %c0_i32, %c0_i32_0 : i32, i32
  }
  func.func @transform_10(%arg0: i32) -> (i32, i32) {
    %c0_i32 = arith.constant 0 : i32
    %c0_i32_0 = arith.constant 0 : i32
    %c0_i32_1 = arith.constant 0 : i32
    return %c0_i32, %c0_i32_0 : i32, i32
  }
  func.func @transform_11(%arg0: i32) -> (i32, i32) {
    %c0_i32 = arith.constant 0 : i32
    %c0_i32_0 = arith.constant 0 : i32
    %c0_i32_1 = arith.constant 0 : i32
    return %c0_i32, %c0_i32_0 : i32, i32
  }
  func.func @transform_12(%arg0: i32) -> (i32, i32) {
    %c0_i32 = arith.constant 0 : i32
    %c0_i32_0 = arith.constant 0 : i32
    %c0_i32_1 = arith.constant 0 : i32
    return %c0_i32, %c0_i32_0 : i32, i32
  }
  func.func @transform_13(%arg0: i32) -> (i32, i32) {
    %c0_i32 = arith.constant 0 : i32
    %c0_i32_0 = arith.constant 0 : i32
    %c0_i32_1 = arith.constant 0 : i32
    return %c0_i32, %c0_i32_0 : i32, i32
  }
  func.func @transform_14(%arg0: i32) -> (i32, i32) {
    %c0_i32 = arith.constant 0 : i32
    %c0_i32_0 = arith.constant 0 : i32
    %c0_i32_1 = arith.constant 0 : i32
    return %c0_i32, %c0_i32_0 : i32, i32
  }
  func.func @transform_15(%arg0: i32) -> (i32, i32) {
    %c0_i32 = arith.constant 0 : i32
    %c0_i32_0 = arith.constant 0 : i32
    %c0_i32_1 = arith.constant 0 : i32
    return %c0_i32, %c0_i32_0 : i32, i32
  }
  func.func @transform_16(%arg0: i32) -> (i32, i32) {
    %c0_i32 = arith.constant 0 : i32
    %c0_i32_0 = arith.constant 0 : i32
    %c0_i32_1 = arith.constant 0 : i32
    return %c0_i32, %c0_i32_0 : i32, i32
  }
  func.func @transform_17(%arg0: i32) -> (i32, i32) {
    %c0_i32 = arith.constant 0 : i32
    %c0_i32_0 = arith.constant 0 : i32
    %c0_i32_1 = arith.constant 0 : i32
    return %c0_i32, %c0_i32_0 : i32, i32
  }
  func.func @transform_18(%arg0: i32) -> (i32, i32) {
    %c0_i32 = arith.constant 0 : i32
    %c0_i32_0 = arith.constant 0 : i32
    %c0_i32_1 = arith.constant 0 : i32
    return %c0_i32, %c0_i32_0 : i32, i32
  }
  func.func @transform_19(%arg0: i32) -> (i32, i32) {
    %c0_i32 = arith.constant 0 : i32
    %c0_i32_0 = arith.constant 0 : i32
    %c0_i32_1 = arith.constant 0 : i32
    return %c0_i32, %c0_i32_0 : i32, i32
  }
  func.func @transform_20(%arg0: i32) -> (i32, i32) {
    %c0_i32 = arith.constant 0 : i32
    %c0_i32_0 = arith.constant 0 : i32
    %c0_i32_1 = arith.constant 0 : i32
    return %c0_i32, %c0_i32_0 : i32, i32
  }
  func.func @transform_21(%arg0: i32) -> (i32, i32) {
    %c0_i32 = arith.constant 0 : i32
    %c0_i32_0 = arith.constant 0 : i32
    %c0_i32_1 = arith.constant 0 : i32
    return %c0_i32, %c0_i32_0 : i32, i32
  }
  func.func @transform_22(%arg0: i32) -> (i32, i32, i32) {
    %c0_i32 = arith.constant 0 : i32
    %c0_i32_0 = arith.constant 0 : i32
    %c0_i32_1 = arith.constant 0 : i32
    return %arg0, %c0_i32, %c0_i32_0 : i32, i32, i32
  }
}

</mosaic_0001>

<bundles_post_ra>
// kernel: tpu_custom_call.1
= control target key start
LH: loop header
LB: loop body
LE: loop exit
PB: predicated region body
PF: predicated region fallthrough
CT: control target
= control target key end

     0   :  { %s3445_s0 = inlined_call_operand.vmem [shape: f32[2,16,32], index: 0, kind: input, shape index: {}]   ;;  %s3446_s1 = inlined_call_operand.vmem [shape: f32[2,32], index: 1, kind: input, shape index: {}]   ;;  %s3447_s2 = inlined_call_operand.vmem [shape: f32[32,64], index: 2, kind: input, shape index: {}]   ;;  %s3448_s3 = inlined_call_operand.vmem [shape: f32[1,64], index: 3, kind: input, shape index: {}]   ;;  %s3449_s4 = inlined_call_operand.vmem [shape: f32[1,32], index: 4, kind: input, shape index: {}]   ;;  %s3450_s5 = inlined_call_operand.vmem [shape: f32[1,32], index: 5, kind: input, shape index: {}]   ;;  %s3451_s6 = inlined_call_operand.vmem [shape: f32[32,32], index: 6, kind: input, shape index: {}]   ;;  %s3452_s7 = inlined_call_operand.vmem [shape: f32[1,32], index: 7, kind: input, shape index: {}]   ;;  %s3453_s8 = inlined_call_operand.vmem [shape: f32[1,32], index: 8, kind: input, shape index: {}]   ;;  %s3454_s9 = inlined_call_operand.vmem [shape: f32[1,32], index: 9, kind: input, shape index: {}]   ;;  %s3455_s10 = inlined_call_operand.vmem [shape: f32[96,32], index: 10, kind: input, shape index: {}]   ;;  %s3456_s11 = inlined_call_operand.vmem [shape: f32[1,32], index: 11, kind: input, shape index: {}]   ;;  %s3457_s12 = inlined_call_operand.vmem [shape: f32[1,32], index: 12, kind: input, shape index: {}]   ;;  %s3458_s13 = inlined_call_operand.vmem [shape: f32[1,32], index: 13, kind: input, shape index: {}]   ;;  %s3459_s14 = inlined_call_operand.vmem [shape: f32[32,96], index: 14, kind: input, shape index: {}]   ;;  %s3460_s15 = inlined_call_operand.vmem [shape: f32[1,96], index: 15, kind: input, shape index: {}]   ;;  %s3461_s16 = inlined_call_operand.vmem [shape: f32[64,16], index: 16, kind: input, shape index: {}]   ;;  %s3462_s17 = inlined_call_operand.vmem [shape: f32[64,32], index: 17, kind: input, shape index: {}]   ;;  %s3463_s18 = inlined_call_operand.vmem [shape: f32[32,32], index: 18, kind: input, shape index: {}]   ;;  %s3464_s19 = inlined_call_operand.vmem [shape: f32[1,32], index: 19, kind: input, shape index: {}]   ;;  %s3465_s20 = inlined_call_operand.vmem [shape: f32[32,16], index: 20, kind: input, shape index: {}]   ;;  %s3466_s21 = inlined_call_operand.vmem [shape: f32[16,32], index: 21, kind: input, shape index: {}]   ;;  %s3467_s22 = inlined_call_operand.hbm [shape: f32[2,16,32], index: 22, kind: output, shape index: {}]  }
   0x1   :  { %3471 = sst [smem:[#allocation5_spill]] %s3445_s0 }
   0x2   :  { %3472 = sst [smem:[#allocation6_spill]] %s3446_s1 }
   0x3   :  { %3473 = sst [smem:[#allocation7_spill]] %s3447_s2 }
   0x4   :  { %3474 = sst [smem:[#allocation8_spill]] %s3448_s3 }
   0x5   :  { %3475 = sst [smem:[#allocation9_spill]] %s3449_s4 }
   0x6   :  { %3476 = sst [smem:[#allocation10_spill]] %s3450_s5 }
   0x7   :  { %3477 = sst [smem:[#allocation11_spill]] %s3451_s6 }
   0x8   :  { %s3478_s29 = sld [smem:[#allocation5_spill]]  ;;  %vm95_vm0 = vcmask 261120  }
   0xe   :  { %v2743_v0 = vld [vmem:[%s3478_s29] sm:$0xff]  ;;  %v2748_v1 = vld [vmem:[%s3478_s29 + $0x8] sm:$0xff]  ;;  %v2753_v2 = vld [vmem:[%s3478_s29 + $0x10] sm:$0xff] }
   0xf   :  { %v171_v3 = vsel %vm95_vm0, %v2743_v0, 0.0  ;;  %v172_v4 = vsel %vm95_vm0, %v2748_v1, 0.0  ;;  %v180_v5 = vmul.f32 %v2743_v0, %v2743_v0  ;;  %v181_v6 = vmul.f32 %v2748_v1, %v2748_v1  ;;  %v2766_v7 = vld [vmem:[%s3478_s29 + $0x18] sm:$0xff] }
  0x10   :  { %27 = vsyncpa [#allocation3], 0  ;;  %v173_v8 = vadd.f32 %v172_v4, %v171_v3  ;;  %v245_v9 = vsel %vm95_vm0, %v2753_v2, 0.0  ;;  %v246_v10 = vsel %vm95_vm0, %v2766_v7, 0.0  ;;  %v254_v11 = vmul.f32 %v2753_v2, %v2753_v2  ;;  %s2614_s1 = smov 32   ;;  %s2615_s5 = smov 127  }
  0x11   :  { %v182_v12 = vsel %vm95_vm0, %v180_v5, 0.0  ;;  %v183_v13 = vsel %vm95_vm0, %v181_v6, 0.0  ;;  %v247_v14 = vadd.f32 %v246_v10, %v245_v9  ;;  %v255_v15 = vmul.f32 %v2766_v7, %v2766_v7  ;;  %s2616_s24 = smov 97   ;;  %s3479_s26 = sld [smem:[#allocation11_spill]]  ;;  %vm3109_vm13 = vmpackc.low %vm95_vm0, %vm95_vm0 }
  0x12   :  { %v174_v16 = vrot.slane %v173_v8, 4  ;;  %v184_v17 = vadd.f32 %v183_v13, %v182_v12  ;;  %v256_v18 = vsel %vm95_vm0, %v254_v11, 0.0  ;;  %vm191_vm1 = vcmask 1040384   ;;  %s3482_s23 = sld [smem:[#allocation9_spill]]  ;;  %s3483_s6 = sld [smem:[#allocation10_spill]] }
  0x13   :  { %v248_v19 = vrot.slane %v247_v14, 4  ;;  %v257_v20 = vsel %vm95_vm0, %v255_v15, 0.0  ;;  %vm193_vm2 = vcmask 1047808   ;;  %v200_v60 = vlaneseq  ;;  %s3484_s2 = sld [smem:[#allocation7_spill]]  ;;  %s3485_s20 = sld [smem:[#allocation6_spill]] }
  0x14   :  { %v175_v21 = vadd.f32 %v174_v16, %v173_v8  ;;  %v185_v22 = vrot.slane %v184_v17, 4  ;;  %v258_v23 = vadd.f32 %v257_v20, %v256_v18  ;;  %vm2618_vm4 = vmmov 0   ;;  %s2622_s3 = smov [#allocation2]  }
  0x15   :  { %v249_v24 = vadd.f32 %v248_v19, %v247_v14  ;;  %v201_v61 = vand.u32 127, %v200_v60  ;;  %v2814_v20 = vshrl.u32 %v200_v60, 7  ;;  %vm775_vm10 = vcmask 523264  }
  0x16   :  { %v176_v25 = vrot.slane %v175_v21, 2  ;;  %v186_v26 = vadd.f32 %v185_v22, %v184_v17  ;;  %v259_v27 = vrot.slane %v258_v23, 4  ;;  %vm792_vm11 = vcmask 785408  }
  0x17   :  { %v250_v28 = vrot.slane %v249_v24, 2  ;;  %v349_v54 = vld [vmem:[%s3479_s26] sm:$0xff]  ;;  %v350_v55 = vld [vmem:[%s3479_s26 + $0x8] sm:$0xff]  ;;  %v351_v56 = vld [vmem:[%s3479_s26 + $0x10] sm:$0xff]  ;;  %v206_v62 = vand.u32 1, %v201_v61  ;;  %vm730_vm5 = vcmp.lt.s32.totalorder %v2814_v20, 7 }
  0x18   :  { %v177_v29 = vadd.f32 %v176_v25, %v175_v21  ;;  %v187_v30 = vrot.slane %v186_v26, 2  ;;  %v260_v31 = vadd.f32 %v259_v27, %v258_v23  ;;  %v2379_v57 = vpack.c.bf16 %v350_v55, %v349_v54  ;;  %v352_v58 = vld [vmem:[%s3479_s26 + $0x18] sm:$0xff]  ;;  %s3486_s26 = sld [smem:[#allocation8_spill]] }
  0x19   :  { %v251_v32 = vadd.f32 %v250_v28, %v249_v24  ;;  %v2383_v59 = vpack.c.bf16 %v352_v58, %v351_v56  ;;  %vm2806_vm3 = vcmp.eq.s32.totalorder %v206_v62, 0  ;;  %v2817_v23 = vsub.s32 0, %v2814_v20 }
  0x1a   :  { %v178_v33 = vrot.slane %v177_v29, 1  ;;  %v188_v34 = vadd.f32 %v187_v30, %v186_v26  ;;  %v261_v35 = vrot.slane %v260_v31, 2  ;;  %2380 = vmatprep.subr.bf16.mxu1 %v2379_v57  ;;  %v2821_v25 = vsub.s32 1, %v2814_v20 }
  0x1b   :  { %v252_v36 = vrot.slane %v251_v32, 1  ;;  %2382 = vmatpush3.bf16.msra.mxu1 %v2379_v57  ;;  %vm713_vm6 = vcmp.lt.s32.totalorder %v2814_v20, 1  ;;  %vm1310_vm14 = vcmask 130048  }
  0x1c   :  { %v179_v37 = vadd.f32 %v178_v33, %v177_v29  ;;  %v189_v38 = vrot.slane %v188_v34, 1  ;;  %v262_v39 = vadd.f32 %v261_v35, %v260_v31  ;;  %2384 = vmatprep.subr.bf16.mxu1 %v2383_v59  ;;  %v2071_v31 = vld [vmem:[%s3482_s23] ss:$0 sm:$0xff] }
  0x1d   :  { %v253_v41 = vadd.f32 %v252_v36, %v251_v32  ;;  %v2072_v36 = vld [vmem:[%s3483_s6] ss:$0 sm:$0xff] }
  0x1e   :  { %v190_v40 = vadd.f32 %v189_v38, %v188_v34  ;;  %v263_v42 = vrot.slane %v262_v39, 1 }
  0x1f   :  { %2386 = vmatpush3.bf16.msra.mxu1 %v2383_v59 }
  0x20   :  { %v192_v43 = vsel %vm191_vm1, %v179_v37, %v190_v40  ;;  %v264_v44 = vadd.f32 %v263_v42, %v262_v39 }
  0x21   :  { %194 = vrot.lane.b32.xlu0 %v192_v43, %s2614_s1 }
  0x22   :  { %v265_v45 = vsel %vm191_vm1, %v253_v41, %v264_v44 }
  0x25   :  { %266 = vrot.lane.b32.xlu0 %v265_v45, %s2614_s1 }
  0x93   :  { %v195_v46 = vpop.permute.xlu0 %194 }
  0x94   :  { %v196_v47 = vsel %vm193_vm2, %v195_v46, %v192_v43 }
  0x95   :  { %197 = vrot.lane.b32.xlu1 %v196_v47, %s2614_s1 }
  0x97   :  { %v267_v48 = vpop.permute.xlu0 %266 }
  0x98   :  { %v268_v49 = vsel %vm193_vm2, %v267_v48, %v265_v45 }
  0x99   :  { %269 = vrot.lane.b32.xlu1 %v268_v49, %s2614_s1 }
 0x107   :  { %v198_v50 = vpop.permute.xlu1 %197 }
 0x108   :  { %v199_v51 = vsel %vm193_vm2, %v198_v50, %v192_v43 }
 0x109   :  { %216 = vrot.lane.b32.xlu0 %v199_v51, %s2615_s5  ;;  %219 = vrot.lane.b32.xlu1 %v199_v51, %s2616_s24 }
 0x10b   :  { %v270_v52 = vpop.permute.xlu1 %269 }
 0x10c   :  { %v271_v53 = vsel %vm193_vm2, %v270_v52, %v265_v45 }
 0x10d   :  { %276 = vrot.lane.b32.xlu1 %v271_v53, %s2616_s24  ;;  %273 = vrot.lane.b32.xlu0 %v271_v53, %s2615_s5 }
 0x17b   :  { %v220_v3 = vpop.permute.xlu1 %219  ;;  %v217_v4 = vpop.permute.xlu0 %216 }
 0x17c   :  { %v222_v5 = vsel %vm2806_vm3, %v217_v4, %v220_v3 }
 0x17d   :  { %v223_v6 = vadd.f32 %v222_v5, %v192_v43 }
 0x17f   :  { %v225_v8 = vmul.f32 0.03125, %v223_v6  ;;  %v277_v9 = vpop.permute.xlu1 %276  ;;  %v274_v10 = vpop.permute.xlu0 %273 }
 0x180   :  { %v279_v11 = vsel %vm2806_vm3, %v274_v10, %v277_v9  ;;  %v84_v10 = vld [vmem:[%s3484_s2] sm:$0xff] }
 0x181   :  { %v226_v12 = vmul.f32 %v225_v8, %v225_v8  ;;  %v280_v13 = vadd.f32 %v279_v11, %v265_v45  ;;  %v234_v24 = vrot.slane %v225_v8, %v2817_v23  ;;  %v85_v11 = vld [vmem:[%s3484_s2 + $0x8] sm:$0xff] }
 0x183   :  { %v228_v14 = vrot.slane %v226_v12, 7  ;;  %v281_v15 = vmul.f32 0.03125, %v280_v13  ;;  %v236_v28 = vsub.f32 %v2748_v1, %v234_v24  ;;  %v235_v29 = vsub.f32 %v2743_v0, %v234_v24  ;;  %v86_v12 = vld [vmem:[%s3484_s2 + $0x10] sm:$0xff] }
 0x184   :  { %v2617_v13 = vmov 0.0|0.0  }
 0x185   :  { %v230_v16 = vsub.f32 %v225_v8, %v228_v14  ;;  %v282_v17 = vmul.f32 %v281_v15, %v281_v15  ;;  %v290_v27 = vrot.slane %v281_v15, %v2817_v23  ;;  %2373 = vmatprep.subr.bf16.mxu0 %v2617_v13  ;;  %v2374_v14 = vpack.c.bf16 %v85_v11, %v84_v10 }
 0x187   :  { %v237_v18 = vadd.f32 1e-05, %v230_v16  ;;  %v284_v19 = vrot.slane %v282_v17, 7  ;;  %v291_v35 = vsub.f32 %v2753_v2, %v290_v27  ;;  %v292_v37 = vsub.f32 %v2766_v7, %v290_v27  ;;  %v76_v17 = vld [vmem:[%s3485_s20] sm:$0x3]  ;;  %2375 = vmatpush3.bf16.msra.mxu0 %v2374_v14 }
 0x188   :  { %v2619_v16 = vmov 0.0   ;;  %2376 = vmatprep.subr.bf16.mxu0 %v2617_v13  ;;  %v2077_v27 = vld [vmem:[%s3452_s7] ss:$0 sm:$0xff] }
 0x189   :  { %2478 = vrsqrt.f32 %v237_v18  ;;  %v286_v21 = vsub.f32 %v281_v15, %v284_v19  ;;  %v87_v15 = vld [vmem:[%s3484_s2 + $0x18] sm:$0xff]  ;;  %2234 = vmatprep.mubr.msk.f32.mxu0 %vm2618_vm4, %v2619_v16  ;;  %v2068_v18 = vmul.f32 -1.442695, %v76_v17  ;;  %s2620_s2 = smov 96  }
 0x18a   :  { %v2377_v19 = vpack.c.bf16 %v87_v15, %v86_v12 }
 0x18b   :  { %v293_v22 = vadd.f32 1e-05, %v286_v21 }
 0x18c   :  { %2378 = vmatpush3.bf16.msra.mxu0 %v2377_v19 }
 0x18d   :  { %2480 = vrsqrt.f32 %v293_v22 }
 0x193   :  { %v2479_v26 = vpop.eup %2478 }
 0x194   :  { %v242_v30 = vrot.slane %v2479_v26, %v2821_v25 }
 0x196   :  { %v243_v32 = vmul.f32 %v242_v30, %v235_v29  ;;  %v244_v33 = vmul.f32 %v242_v30, %v236_v28 }
 0x197   :  { %v2481_v34 = vpop.eup %2480 }
 0x198   :  { %v298_v38 = vrot.slane %v2481_v34, %v2821_v25  ;;  %v307_v39 = vmul.f32 %v2071_v31, %v243_v32  ;;  %v308_v40 = vmul.f32 %v2071_v31, %v244_v33 }
 0x19a   :  { %v299_v41 = vmul.f32 %v298_v38, %v291_v35  ;;  %v300_v42 = vmul.f32 %v298_v38, %v292_v37  ;;  %v317_v43 = vadd.f32 %v2072_v36, %v307_v39  ;;  %v318_v44 = vadd.f32 %v2072_v36, %v308_v40 }
 0x19c   :  { %v2073_v45 = vmul.f32 -1.442695, %v317_v43  ;;  %v2074_v46 = vmul.f32 -1.442695, %v318_v44  ;;  %v309_v47 = vmul.f32 %v2071_v31, %v299_v41  ;;  %v310_v48 = vmul.f32 %v2071_v31, %v300_v42 }
 0x19e   :  { %2482 = vpow2.f32 %v2073_v45  ;;  %v319_v49 = vadd.f32 %v2072_v36, %v309_v47  ;;  %v320_v50 = vadd.f32 %v2072_v36, %v310_v48 }
 0x19f   :  { %2484 = vpow2.f32 %v2074_v46 }
 0x1a0   :  { %v2075_v51 = vmul.f32 -1.442695, %v319_v49  ;;  %v2076_v52 = vmul.f32 -1.442695, %v320_v50 }
 0x1a2   :  { %2486 = vpow2.f32 %v2075_v51 }
 0x1a3   :  { %2488 = vpow2.f32 %v2076_v52 }
 0x1a8   :  { %v2483_v53 = vpop.eup %2482 }
 0x1a9   :  { %v2485_v54 = vpop.eup %2484  ;;  %v333_v55 = vadd.f32 1.0, %v2483_v53 }
 0x1aa   :  { %v334_v56 = vadd.f32 1.0, %v2485_v54 }
 0x1ab   :  { %2490 = vrcp.f32 %v333_v55 }
 0x1ac   :  { %v2487_v57 = vpop.eup %2486  ;;  %2492 = vrcp.f32 %v334_v56 }
 0x1ad   :  { %v2489_v58 = vpop.eup %2488  ;;  %v335_v59 = vadd.f32 1.0, %v2487_v57 }
 0x1ae   :  { %v336_v60 = vadd.f32 1.0, %v2489_v58 }
 0x1af   :  { %2494 = vrcp.f32 %v335_v59 }
 0x1b0   :  { %2496 = vrcp.f32 %v336_v60 }
 0x1b1   :  { %2498 = vpow2.f32 %v2068_v18 }
 0x1b5   :  { %v2491_v61 = vpop.eup %2490 }
 0x1b6   :  { %v2493_v62 = vpop.eup %2492  ;;  %v345_v3 = vmul.f32 %v2491_v61, %v317_v43 }
 0x1b7   :  { %v346_v4 = vmul.f32 %v2493_v62, %v318_v44 }
 0x1b8   :  { %2245 = vmatprep.mubr.msk.f32.mxu1 %vm95_vm0, %v345_v3 }
 0x1b9   :  { %v2495_v5 = vpop.eup %2494  ;;  %2246 = vmatmul.mubr.msk.f32.vlgmr.msra.gmra.mrb[0].mxu1 %vm95_vm0, %v346_v4 }
 0x1ba   :  { %v2497_v6 = vpop.eup %2496  ;;  %v347_v8 = vmul.f32 %v2495_v5, %v319_v49 }
 0x1bb   :  { %v348_v9 = vmul.f32 %v2497_v6, %v320_v50  ;;  %v2499_v21 = vpop.eup %2498 }
 0x1bc   :  { %2248 = vmatprep.mubr.msk.f32.mxu1 %vm95_vm0, %v347_v8  ;;  %v80_v22 = vadd.f32 1.0, %v2499_v21 }
 0x1bd   :  { %2249 = vmatmul.mubr.msk.f32.gmra.mrb[2].mxu1 %vm95_vm0, %v348_v9 }
 0x1be   :  { %2500 = vrcp.f32 %v80_v22 }
 0x1c8   :  { %v2501_v24 = vpop.eup %2500 }
 0x1c9   :  { %v83_v26 = vmul.f32 %v2501_v24, %v76_v17 }
 0x1cb   :  { %2235 = vmatmul.mubr.msk.f32.vlgmr.msra.gmra.mrb[0].mxu0 %vm95_vm0, %v83_v26 }
 0x28c   :  { %v2247_v28 = vpop.f32.mrb[0].mxu1 }
 0x28d   :  { %v2859_v29 = vadd.f32 %v2247_v28, %v2077_v27  ;;  %v438_v30 = vpop.f32.mrb[1].mxu1  ;;  %v2069_v28 = vld [vmem:[%s3486_s26] ss:$0 sm:$0xff] }
 0x28e   :  { %v2861_v31 = vadd.f32 %v2077_v27, %v438_v30 }
 0x28f   :  { %v460_v32 = vsel %vm95_vm0, %v2859_v29, 0.0  ;;  %v469_v33 = vmul.f32 %v2859_v29, %v2859_v29 }
 0x290   :  { %v459_v34 = vsel %vm95_vm0, %v2861_v31, 0.0  ;;  %v468_v35 = vmul.f32 %v2861_v31, %v2861_v31  ;;  %v2250_v36 = vpop.f32.mrb[2].mxu1 }
 0x291   :  { %v471_v37 = vsel %vm95_vm0, %v469_v33, 0.0  ;;  %v461_v38 = vadd.f32 %v460_v32, %v459_v34  ;;  %v2872_v39 = vadd.f32 %v2250_v36, %v2077_v27  ;;  %v448_v40 = vpop.f32.mrb[3].mxu1 }
 0x292   :  { %v470_v41 = vsel %vm95_vm0, %v468_v35, 0.0  ;;  %v2875_v42 = vadd.f32 %v2077_v27, %v448_v40  ;;  %v781_v40 = vld [vmem:[%s3455_s10 + $0x8] sm:$0xff] }
 0x293   :  { %v462_v43 = vrot.slane %v461_v38, 4  ;;  %v472_v44 = vadd.f32 %v471_v37, %v470_v41  ;;  %v516_v45 = vsel %vm95_vm0, %v2872_v39, 0.0  ;;  %v525_v46 = vmul.f32 %v2872_v39, %v2872_v39  ;;  %v782_v41 = vld [vmem:[%s3455_s10 + $0x10] sm:$0xff] }
 0x294   :  { %v515_v47 = vsel %vm95_vm0, %v2875_v42, 0.0  ;;  %v524_v48 = vmul.f32 %v2875_v42, %v2875_v42 }
 0x295   :  { %v463_v49 = vadd.f32 %v462_v43, %v461_v38  ;;  %v473_v50 = vrot.slane %v472_v44, 4  ;;  %v527_v51 = vsel %vm95_vm0, %v525_v46, 0.0  ;;  %v517_v52 = vadd.f32 %v516_v45, %v515_v47  ;;  %v780_v38 = vld [vmem:[%s3455_s10] sm:$0xff]  ;;  %v785_v47 = vld [vmem:[%s3455_s10 + $0x28] sm:$0xff] }
 0x296   :  { %v526_v53 = vsel %vm95_vm0, %v524_v48, 0.0  ;;  %v2387_v43 = vpack.c.bf16 %v781_v40, %v780_v38  ;;  %v784_v46 = vld [vmem:[%s3455_s10 + $0x20] sm:$0xff] }
 0x297   :  { %v464_v54 = vrot.slane %v463_v49, 2  ;;  %v474_v55 = vadd.f32 %v473_v50, %v472_v44  ;;  %v518_v56 = vrot.slane %v517_v52, 4  ;;  %v528_v57 = vadd.f32 %v527_v51, %v526_v53  ;;  %v783_v44 = vld [vmem:[%s3455_s10 + $0x18] sm:$0xff] }
 0x298   :  { %v2391_v45 = vpack.c.bf16 %v783_v44, %v782_v41  ;;  %2388 = vmatprep.subr.bf16.mxu0 %v2387_v43  ;;  %v2395_v48 = vpack.c.bf16 %v785_v47, %v784_v46  ;;  %v787_v50 = vld [vmem:[%s3455_s10 + $0x38] sm:$0xff] }
 0x299   :  { %v519_v58 = vadd.f32 %v518_v56, %v517_v52  ;;  %v529_v59 = vrot.slane %v528_v57, 4  ;;  %v465_v60 = vadd.f32 %v464_v54, %v463_v49  ;;  %v475_v61 = vrot.slane %v474_v55, 2  ;;  %2390 = vmatpush3.bf16.msra.mxu0 %v2387_v43  ;;  %v786_v49 = vld [vmem:[%s3455_s10 + $0x30] sm:$0xff] }
 0x29a   :  { %2392 = vmatprep.subr.bf16.mxu0 %v2391_v45  ;;  %v2399_v51 = vpack.c.bf16 %v787_v50, %v786_v49 }
 0x29b   :  { %v520_v62 = vrot.slane %v519_v58, 2  ;;  %v530_v3 = vadd.f32 %v529_v59, %v528_v57  ;;  %v466_v4 = vrot.slane %v465_v60, 1  ;;  %v476_v5 = vadd.f32 %v475_v61, %v474_v55 }
 0x29d   :  { %v477_v6 = vrot.slane %v476_v5, 1  ;;  %v521_v8 = vadd.f32 %v520_v62, %v519_v58  ;;  %v531_v9 = vrot.slane %v530_v3, 2  ;;  %v467_v10 = vadd.f32 %v466_v4, %v465_v60  ;;  %2394 = vmatpush3.bf16.msra.mxu0 %v2391_v45 }
 0x29e   :  { %v165_v22 = vpop.f32.mrb[0].mxu0  ;;  %2396 = vmatprep.subr.bf16.mxu0 %v2395_v48 }
 0x29f   :  { %v478_v11 = vadd.f32 %v477_v6, %v476_v5  ;;  %v522_v12 = vrot.slane %v521_v8, 1  ;;  %v532_v13 = vadd.f32 %v531_v9, %v530_v3  ;;  %v2236_v26 = vpop.f32.mrb[1].mxu0  ;;  %v166_v33 = vadd.f32 %v2069_v28, %v165_v22 }
 0x2a0   :  { %v2083_v26 = vld [vmem:[%s3454_s9] ss:$0 sm:$0xff] }
 0x2a1   :  { %v479_v14 = vsel %vm191_vm1, %v467_v10, %v478_v11  ;;  %v533_v15 = vrot.slane %v532_v13, 1  ;;  %v523_v16 = vadd.f32 %v522_v12, %v521_v8  ;;  %v601_v36 = vrot.slane %v166_v33, %v2817_v23  ;;  %2398 = vmatpush3.bf16.msra.mxu0 %v2395_v48 }
 0x2a2   :  { %480 = vrot.lane.b32.xlu0 %v479_v14, %s2614_s1  ;;  %v617_v37 = vrot.slane %v166_v33, %v2821_v25  ;;  %2400 = vmatprep.subr.bf16.mxu0 %v2399_v51 }
 0x2a3   :  { %v534_v17 = vadd.f32 %v533_v15, %v532_v13 }
 0x2a5   :  { %v535_v18 = vsel %vm191_vm1, %v523_v16, %v534_v17  ;;  %2402 = vmatpush3.bf16.msra.mxu0 %v2399_v51  ;;  %v591_v17 = vadd.f32 1.0, %v166_v33 }
 0x2a6   :  { %536 = vrot.lane.b32.xlu1 %v535_v18, %s2614_s1 }
 0x2a7   :  { %v611_v41 = vrot.slane %v591_v17, %v2821_v25 }
 0x314   :  { %v481_v19 = vpop.permute.xlu0 %480 }
 0x315   :  { %v482_v21 = vsel %vm193_vm2, %v481_v19, %v479_v14 }
 0x316   :  { %483 = vrot.lane.b32.xlu0 %v482_v21, %s2614_s1 }
 0x318   :  { %v537_v24 = vpop.permute.xlu1 %536 }
 0x319   :  { %v538_v27 = vsel %vm193_vm2, %v537_v24, %v535_v18 }
 0x31a   :  { %539 = vrot.lane.b32.xlu1 %v538_v27, %s2614_s1 }
 0x388   :  { %v484_v30 = vpop.permute.xlu0 %483 }
 0x389   :  { %v485_v32 = vsel %vm193_vm2, %v484_v30, %v479_v14  ;;  %v595_v30 = vrot.slane %v591_v17, %v2817_v23 }
 0x38a   :  { %490 = vrot.lane.b32.xlu1 %v485_v32, %s2616_s24  ;;  %487 = vrot.lane.b32.xlu0 %v485_v32, %s2615_s5 }
 0x38c   :  { %v540_v34 = vpop.permute.xlu1 %539 }
 0x38d   :  { %v541_v35 = vsel %vm193_vm2, %v540_v34, %v535_v18 }
 0x38e   :  { %546 = vrot.lane.b32.xlu1 %v541_v35, %s2616_s24  ;;  %543 = vrot.lane.b32.xlu0 %v541_v35, %s2615_s5 }
 0x392   :  { %603 = vrot.lane.b32.xlu0 %v601_v36, %s2620_s2  ;;  %619 = vrot.lane.b32.xlu1 %v617_v37, %s2620_s2 }
 0x3fc   :  { %v491_v52 = vpop.permute.xlu1 %490  ;;  %v488_v53 = vpop.permute.xlu0 %487 }
 0x3fd   :  { %v493_v54 = vsel %vm2806_vm3, %v488_v53, %v491_v52 }
 0x3fe   :  { %v494_v55 = vadd.f32 %v493_v54, %v479_v14 }
 0x400   :  { %v495_v56 = vmul.f32 0.03125, %v494_v55  ;;  %v547_v57 = vpop.permute.xlu1 %546  ;;  %v544_v58 = vpop.permute.xlu0 %543 }
 0x401   :  { %v549_v59 = vsel %vm2806_vm3, %v544_v58, %v547_v57 }
 0x402   :  { %v496_v60 = vmul.f32 %v495_v56, %v495_v56  ;;  %v550_v61 = vadd.f32 %v549_v59, %v535_v18  ;;  %v504_v11 = vrot.slane %v495_v56, %v2817_v23  ;;  %v2082_v18 = vld [vmem:[%s3453_s8] ss:$0 sm:$0xff] }
 0x403   :  { %v788_v59 = vld [vmem:[%s3455_s10 + $0x40] sm:$0xff] }
 0x404   :  { %v498_v62 = vrot.slane %v496_v60, 7  ;;  %v551_v3 = vmul.f32 0.03125, %v550_v61  ;;  %v505_v14 = vsub.f32 %v2861_v31, %v504_v11  ;;  %v506_v15 = vsub.f32 %v2859_v29, %v504_v11  ;;  %v604_v36 = vpop.permute.xlu0 %603  ;;  %v620_v46 = vpop.permute.xlu1 %619  ;;  %v789_v60 = vld [vmem:[%s3455_s10 + $0x48] sm:$0xff] }
 0x405   :  { %v2403_v61 = vpack.c.bf16 %v789_v60, %v788_v59 }
 0x406   :  { %v500_v4 = vsub.f32 %v495_v56, %v498_v62  ;;  %v552_v5 = vmul.f32 %v551_v3, %v551_v3  ;;  %v560_v13 = vrot.slane %v551_v3, %v2817_v23 }
 0x407   :  { %2404 = vmatprep.subr.bf16.mxu0 %v2403_v61 }
 0x408   :  { %v507_v6 = vadd.f32 1e-05, %v500_v4  ;;  %v554_v8 = vrot.slane %v552_v5, 7  ;;  %v561_v24 = vsub.f32 %v2875_v42, %v560_v13  ;;  %v562_v31 = vsub.f32 %v2872_v39, %v560_v13  ;;  %2406 = vmatpush3.bf16.msra.mxu0 %v2403_v61 }
 0x40a   :  { %2502 = vrsqrt.f32 %v507_v6  ;;  %v556_v9 = vsub.f32 %v551_v3, %v554_v8  ;;  %v790_v6 = vld [vmem:[%s3455_s10 + $0x50] sm:$0xff]  ;;  %v791_v8 = vld [vmem:[%s3455_s10 + $0x58] sm:$0xff]  ;;  %s2621_s10 = smov 64  }
 0x40c   :  { %v563_v10 = vadd.f32 1e-05, %v556_v9  ;;  %v2407_v9 = vpack.c.bf16 %v791_v8, %v790_v6 }
 0x40e   :  { %2504 = vrsqrt.f32 %v563_v10  ;;  %2408 = vmatprep.subr.bf16.mxu0 %v2407_v9  ;;  %v654_v10 = vadd.s32 8, %v2814_v20 }
 0x40f   :  { %2410 = vmatpush3.bf16.msra.mxu0 %v2407_v9 }
 0x410   :  { %v668_v17 = vand.u32 15, %v654_v10 }
 0x412   :  { %vm723_vm7 = vcmp.eq.s32.totalorder %v668_v17, 15 }
 0x414   :  { %v2503_v12 = vpop.eup %2502 }
 0x415   :  { %v512_v16 = vrot.slane %v2503_v12, %v2821_v25 }
 0x417   :  { %v513_v19 = vmul.f32 %v512_v16, %v505_v14  ;;  %v514_v21 = vmul.f32 %v512_v16, %v506_v15 }
 0x418   :  { %v2505_v22 = vpop.eup %2504 }
 0x419   :  { %v577_v27 = vmul.f32 %v2082_v18, %v513_v19  ;;  %v578_v29 = vmul.f32 %v2082_v18, %v514_v21  ;;  %v568_v28 = vrot.slane %v2505_v22, %v2821_v25 }
 0x41b   :  { %v587_v32 = vadd.f32 %v2083_v26, %v577_v27  ;;  %v588_v33 = vadd.f32 %v2083_v26, %v578_v29  ;;  %v569_v34 = vmul.f32 %v568_v28, %v561_v24  ;;  %v570_v35 = vmul.f32 %v568_v28, %v562_v31 }
 0x41d   :  { %v596_v37 = vmul.f32 %v595_v30, %v587_v32  ;;  %v597_v38 = vmul.f32 %v595_v30, %v588_v33  ;;  %v579_v42 = vmul.f32 %v2082_v18, %v569_v34  ;;  %v580_v40 = vmul.f32 %v2082_v18, %v570_v35 }
 0x41e   :  { %v656_v30 = vadd.s32 24, %v2814_v20 }
 0x41f   :  { %v606_v43 = vadd.f32 %v604_v36, %v596_v37  ;;  %v607_v44 = vadd.f32 %v604_v36, %v597_v38  ;;  %v589_v39 = vadd.f32 %v2083_v26, %v579_v42  ;;  %v590_v45 = vadd.f32 %v2083_v26, %v580_v40 }
 0x420   :  { %v682_v38 = vand.u32 15, %v656_v30 }
 0x421   :  { %v2084_v47 = vmul.f32 -1.442695, %v606_v43  ;;  %v2085_v48 = vmul.f32 -1.442695, %v607_v44  ;;  %v612_v49 = vmul.f32 %v611_v41, %v589_v39  ;;  %v613_v50 = vmul.f32 %v611_v41, %v590_v45 }
 0x422   :  { %vm725_vm8 = vcmp.eq.s32.totalorder %v682_v38, 15  ;;  %v655_v45 = vadd.s32 16, %v2814_v20 }
 0x423   :  { %2506 = vpow2.f32 %v2084_v47  ;;  %v622_v51 = vadd.f32 %v620_v46, %v612_v49  ;;  %v623_v52 = vadd.f32 %v620_v46, %v613_v50 }
 0x424   :  { %2508 = vpow2.f32 %v2085_v48  ;;  %v675_v50 = vand.u32 15, %v655_v45 }
 0x425   :  { %v2086_v53 = vmul.f32 -1.442695, %v622_v51  ;;  %v2087_v54 = vmul.f32 -1.442695, %v623_v52 }
 0x426   :  { %vm707_vm12 = vcmp.eq.s32.totalorder %v675_v50, 0 }
 0x427   :  { %2510 = vpow2.f32 %v2086_v53 }
 0x428   :  { %2512 = vpow2.f32 %v2087_v54 }
 0x42d   :  { %v2507_v55 = vpop.eup %2506 }
 0x42e   :  { %v2509_v56 = vpop.eup %2508  ;;  %v636_v57 = vadd.f32 1.0, %v2507_v55 }
 0x42f   :  { %v637_v58 = vadd.f32 1.0, %v2509_v56 }
 0x430   :  { %2514 = vrcp.f32 %v636_v57 }
 0x431   :  { %v2511_v62 = vpop.eup %2510  ;;  %2516 = vrcp.f32 %v637_v58 }
 0x432   :  { %v2513_v3 = vpop.eup %2512  ;;  %v638_v4 = vadd.f32 1.0, %v2511_v62 }
 0x433   :  { %v639_v5 = vadd.f32 1.0, %v2513_v3 }
 0x434   :  { %2518 = vrcp.f32 %v638_v4  ;;  %v2092_v4 = vld [vmem:[%s3456_s11] ss:$0 sm:$0xff] }
 0x435   :  { %2520 = vrcp.f32 %v639_v5 }
 0x43a   :  { %v2515_v11 = vpop.eup %2514 }
 0x43b   :  { %v2517_v12 = vpop.eup %2516  ;;  %v648_v13 = vmul.f32 %v2515_v11, %v606_v43 }
 0x43c   :  { %v649_v14 = vmul.f32 %v2517_v12, %v607_v44  ;;  %v661_v44 = vand.u32 15, %v2814_v20 }
 0x43d   :  { %v709_v15 = vrot.slane %v648_v13, 7  ;;  %743 = vrot.lane.b32.xlu0 %v648_v13, %s2614_s1  ;;  %v726_v16 = vrot.slane %v648_v13, 1 }
 0x43e   :  { %v2519_v18 = vpop.eup %2518  ;;  %v710_v19 = vrot.slane %v649_v14, 7  ;;  %745 = vrot.lane.b32.xlu1 %v649_v14, %s2614_s1  ;;  %v727_v21 = vrot.slane %v649_v14, 1  ;;  %vm705_vm9 = vcmp.eq.s32.totalorder %v661_v44, 0 }
 0x43f   :  { %v2521_v22 = vpop.eup %2520  ;;  %v650_v24 = vmul.f32 %v2519_v18, %v622_v51 }
 0x440   :  { %v651_v26 = vmul.f32 %v2521_v22, %v623_v52  ;;  %v733_v31 = vsel %vm730_vm5, %v726_v16, %v727_v21  ;;  %v716_v27 = vsel %vm713_vm6, %v709_v15, %v710_v19 }
 0x441   :  { %v711_v29 = vrot.slane %v650_v24, 7  ;;  %759 = vrot.lane.b32.xlu0 %v733_v31, %s2621_s10  ;;  %v728_v28 = vrot.slane %v650_v24, 1 }
 0x442   :  { %v712_v32 = vrot.slane %v651_v26, 7  ;;  %v729_v36 = vrot.slane %v651_v26, 1 }
 0x443   :  { %v732_v33 = vsel %vm730_vm5, %v727_v21, %v728_v28  ;;  %v715_v34 = vsel %vm713_vm6, %v710_v19, %v711_v29 }
 0x444   :  { %v736_v35 = vsel %vm723_vm7, 0.0, %v732_v33  ;;  %v717_v37 = vsel %vm713_vm6, %v712_v32, %v709_v15  ;;  %v714_v42 = vsel %vm713_vm6, %v711_v29, %v712_v32  ;;  %v731_v40 = vsel %vm730_vm5, %v728_v28, %v729_v36 }
 0x445   :  { %761 = vrot.lane.b32.xlu1 %v736_v35, %s2621_s10  ;;  %747 = vrot.lane.b32.xlu0 %v650_v24, %s2614_s1  ;;  %v734_v41 = vsel %vm730_vm5, %v729_v36, %v726_v16  ;;  %v718_v46 = vsel %vm705_vm9, 0.0, %v717_v37  ;;  %v720_v20 = vsel %vm707_vm12, 0.0, %v715_v34 }
 0x446   :  { %v738_v43 = vsel %vm725_vm8, 0.0, %v734_v41 }
 0x449   :  { %749 = vrot.lane.b32.xlu1 %v651_v26, %s2614_s1  ;;  %763 = vrot.lane.b32.xlu0 %v731_v40, %s2621_s10 }
 0x44d   :  { %765 = vrot.lane.b32.xlu1 %v738_v43, %s2621_s10 }
 0x4af   :  { %v744_v39 = vpop.permute.xlu0 %743 }
 0x4b0   :  { %v746_v47 = vpop.permute.xlu1 %745  ;;  %v771_v48 = vsel %vm95_vm0, %v718_v46, %v744_v39 }
 0x4b1   :  { %v772_v52 = vsel %vm95_vm0, %v716_v27, %v746_v47 }
 0x4b3   :  { %v760_v49 = vpop.permute.xlu0 %759 }
 0x4b4   :  { %v776_v51 = vsel %vm775_vm10, %v771_v48, %v760_v49 }
 0x4b5   :  { %2275 = vmatprep.mubr.msk.f32.mxu0 %vm792_vm11, %v776_v51 }
 0x4b7   :  { %v762_v53 = vpop.permute.xlu1 %761  ;;  %v748_v54 = vpop.permute.xlu0 %747 }
 0x4b8   :  { %v777_v55 = vsel %vm775_vm10, %v772_v52, %v762_v53  ;;  %v773_v56 = vsel %vm95_vm0, %v720_v20, %v748_v54 }
 0x4b9   :  { %2276 = vmatmul.mubr.msk.f32.vlgmr.msra.gmra.mrb[2].mxu0 %vm792_vm11, %v777_v55 }
 0x4bb   :  { %v750_v57 = vpop.permute.xlu1 %749  ;;  %v764_v58 = vpop.permute.xlu0 %763 }
 0x4bc   :  { %v778_v59 = vsel %vm775_vm10, %v773_v56, %v764_v58  ;;  %v774_v60 = vsel %vm95_vm0, %v714_v42, %v750_v57 }
 0x4bd   :  { %2278 = vmatprep.mubr.msk.f32.mxu0 %vm792_vm11, %v778_v59 }
 0x4bf   :  { %v766_v61 = vpop.permute.xlu1 %765 }
 0x4c0   :  { %v779_v62 = vsel %vm775_vm10, %v774_v60, %v766_v61 }
 0x4c1   :  { %2279 = vmatmul.mubr.msk.f32.gmra.mrb[4].mxu0 %vm792_vm11, %v779_v62 }
 0x58c   :  { %v2277_v3 = vpop.f32.mrb[2].mxu0 }
 0x58d   :  { %v891_v5 = vadd.f32 %v2277_v3, %v2748_v1  ;;  %v871_v6 = vpop.f32.mrb[3].mxu0 }
 0x58e   :  { %v890_v8 = vadd.f32 %v871_v6, %v2743_v0  ;;  %v1040_v6 = vld [vmem:[%s3459_s14 + $0x8] sm:$0xff] }
 0x58f   :  { %v3011_v9 = vadd.f32 %v2092_v4, %v891_v5  ;;  %v1039_v5 = vld [vmem:[%s3459_s14] sm:$0xff] }
 0x590   :  { %v3013_v10 = vadd.f32 %v2092_v4, %v890_v8  ;;  %v2411_v8 = vpack.c.bf16 %v1040_v6, %v1039_v5 }
 0x591   :  { %v908_v11 = vsel %vm95_vm0, %v3011_v9, 0.0  ;;  %v917_v12 = vmul.f32 %v3011_v9, %v3011_v9 }
 0x592   :  { %v907_v13 = vsel %vm95_vm0, %v3013_v10, 0.0  ;;  %v916_v14 = vmul.f32 %v3013_v10, %v3013_v10  ;;  %2412 = vmatprep.subr.bf16.mxu1 %v2411_v8 }
 0x593   :  { %v919_v1 = vsel %vm95_vm0, %v917_v12, 0.0  ;;  %v909_v15 = vadd.f32 %v908_v11, %v907_v13  ;;  %v1041_v11 = vld [vmem:[%s3459_s14 + $0x10] sm:$0xff]  ;;  %v1042_v12 = vld [vmem:[%s3459_s14 + $0x18] sm:$0xff]  ;;  %2414 = vmatpush3.bf16.msra.mxu1 %v2411_v8 }
 0x594   :  { %v918_v0 = vsel %vm95_vm0, %v916_v14, 0.0  ;;  %v2280_v16 = vpop.f32.mrb[4].mxu0  ;;  %v2415_v13 = vpack.c.bf16 %v1042_v12, %v1041_v11 }
 0x595   :  { %v910_v17 = vrot.slane %v909_v15, 4  ;;  %v920_v18 = vadd.f32 %v919_v1, %v918_v0  ;;  %v893_v19 = vadd.f32 %v2280_v16, %v2766_v7  ;;  %v881_v21 = vpop.f32.mrb[5].mxu0 }
 0x596   :  { %v892_v22 = vadd.f32 %v881_v21, %v2753_v2  ;;  %2416 = vmatprep.subr.bf16.mxu1 %v2415_v13 }
 0x597   :  { %v3027_v24 = vadd.f32 %v2092_v4, %v893_v19  ;;  %v911_v26 = vadd.f32 %v910_v17, %v909_v15  ;;  %v921_v31 = vrot.slane %v920_v18, 4  ;;  %2418 = vmatpush3.bf16.msra.mxu1 %v2415_v13 }
 0x598   :  { %v3029_v27 = vadd.f32 %v2092_v4, %v892_v22 }
 0x599   :  { %v964_v29 = vsel %vm95_vm0, %v3027_v24, 0.0  ;;  %v973_v28 = vmul.f32 %v3027_v24, %v3027_v24  ;;  %v912_v30 = vrot.slane %v911_v26, 2  ;;  %v922_v32 = vadd.f32 %v921_v31, %v920_v18 }
 0x59a   :  { %v963_v7 = vsel %vm95_vm0, %v3029_v27, 0.0  ;;  %v972_v2 = vmul.f32 %v3029_v27, %v3029_v27 }
 0x59b   :  { %v975_v33 = vsel %vm95_vm0, %v973_v28, 0.0  ;;  %v965_v34 = vadd.f32 %v964_v29, %v963_v7  ;;  %v913_v35 = vadd.f32 %v912_v30, %v911_v26  ;;  %v923_v36 = vrot.slane %v922_v32, 2 }
 0x59c   :  { %v974_v37 = vsel %vm95_vm0, %v972_v2, 0.0 }
 0x59d   :  { %v966_v38 = vrot.slane %v965_v34, 4  ;;  %v976_v42 = vadd.f32 %v975_v33, %v974_v37  ;;  %v914_v40 = vrot.slane %v913_v35, 1  ;;  %v924_v41 = vadd.f32 %v923_v36, %v922_v32  ;;  %v2093_v37 = vld [vmem:[%s3457_s12] ss:$0 sm:$0xff] }
 0x59f   :  { %v925_v43 = vrot.slane %v924_v41, 1  ;;  %v967_v44 = vadd.f32 %v966_v38, %v965_v34  ;;  %v977_v39 = vrot.slane %v976_v42, 4  ;;  %v915_v45 = vadd.f32 %v914_v40, %v913_v35  ;;  %v2094_v40 = vld [vmem:[%s3458_s13] ss:$0 sm:$0xff] }
 0x5a1   :  { %v926_v46 = vadd.f32 %v925_v43, %v924_v41  ;;  %v968_v47 = vrot.slane %v967_v44, 2  ;;  %v978_v48 = vadd.f32 %v977_v39, %v976_v42 }
 0x5a3   :  { %v927_v49 = vsel %vm191_vm1, %v915_v45, %v926_v46  ;;  %v969_v50 = vadd.f32 %v968_v47, %v967_v44  ;;  %v979_v51 = vrot.slane %v978_v48, 2 }
 0x5a4   :  { %928 = vrot.lane.b32.xlu0 %v927_v49, %s2614_s1 }
 0x5a5   :  { %v970_v52 = vrot.slane %v969_v50, 1  ;;  %v980_v53 = vadd.f32 %v979_v51, %v978_v48 }
 0x5a7   :  { %v981_v54 = vrot.slane %v980_v53, 1  ;;  %v971_v55 = vadd.f32 %v970_v52, %v969_v50 }
 0x5a9   :  { %v982_v20 = vadd.f32 %v981_v54, %v980_v53 }
 0x5ab   :  { %v983_v56 = vsel %vm191_vm1, %v971_v55, %v982_v20  ;;  %v2095_v55 = vld [vmem:[%s3460_s15] ss:$0 sm:$0xff] }
 0x5ac   :  { %984 = vrot.lane.b32.xlu1 %v983_v56, %s2614_s1 }
 0x616   :  { %v929_v57 = vpop.permute.xlu0 %928 }
 0x617   :  { %v930_v58 = vsel %vm193_vm2, %v929_v57, %v927_v49 }
 0x618   :  { %931 = vrot.lane.b32.xlu0 %v930_v58, %s2614_s1 }
 0x61e   :  { %v985_v59 = vpop.permute.xlu1 %984 }
 0x61f   :  { %v986_v60 = vsel %vm193_vm2, %v985_v59, %v983_v56 }
 0x620   :  { %987 = vrot.lane.b32.xlu1 %v986_v60, %s2614_s1  ;;  %s2057_s1 = sshll.u32 %s2622_s3, 4  ;;  %s2058_s1 = int_to_ptr.vmem [resolvable:$true] %s2057_s1 }
 0x621   :  { %p2595_p1 = scmp.lt.s32.totalorder %s2058_s1, %s2058_s1 }
 0x68a   :  { %v932_v61 = vpop.permute.xlu0 %931 }
 0x68b   :  { %v933_v62 = vsel %vm193_vm2, %v932_v61, %v927_v49 }
 0x68c   :  { %935 = vrot.lane.b32.xlu0 %v933_v62, %s2615_s5  ;;  %938 = vrot.lane.b32.xlu1 %v933_v62, %s2616_s24 }
 0x692   :  { %v988_v3 = vpop.permute.xlu1 %987 }
 0x693   :  { %v989_v4 = vsel %vm193_vm2, %v988_v3, %v983_v56 }
 0x694   :  { %994 = vrot.lane.b32.xlu1 %v989_v4, %s2616_s24  ;;  %991 = vrot.lane.b32.xlu0 %v989_v4, %s2615_s5 }
 0x6fe   :  { %v936_v14 = vpop.permute.xlu0 %935  ;;  %v939_v1 = vpop.permute.xlu1 %938 }
 0x6ff   :  { %v941_v15 = vsel %vm2806_vm3, %v936_v14, %v939_v1  ;;  %v3120_v1 = vld [vmem:[%s3462_s17 + $0x8] sm:$0xff] }
 0x700   :  { %v942_v0 = vadd.f32 %v941_v15, %v927_v49 }
 0x702   :  { %v943_v16 = vmul.f32 0.03125, %v942_v0 }
 0x704   :  { %v944_v17 = vmul.f32 %v943_v16, %v943_v16  ;;  %v952_v33 = vrot.slane %v943_v16, %v2817_v23 }
 0x706   :  { %v946_v18 = vrot.slane %v944_v17, 7  ;;  %v992_v19 = vpop.permute.xlu0 %991  ;;  %v995_v21 = vpop.permute.xlu1 %994  ;;  %v953_v35 = vsub.f32 %v3013_v10, %v952_v33  ;;  %v954_v36 = vsub.f32 %v3011_v9, %v952_v33 }
 0x707   :  { %v997_v22 = vsel %vm2806_vm3, %v992_v19, %v995_v21  ;;  %v3132_v21 = vld [vmem:[%s3462_s17 + $0x18] sm:$0xff] }
 0x708   :  { %v948_v26 = vsub.f32 %v943_v16, %v946_v18  ;;  %v998_v31 = vadd.f32 %v997_v22, %v983_v56  ;;  %v3125_v16 = vld [vmem:[%s3462_s17 + $0x10] sm:$0xff]  ;;  %v3140_v22 = vld [vmem:[%s3462_s17 + $0x20] sm:$0xff] }
 0x70a   :  { %v955_v29 = vadd.f32 1e-05, %v948_v26  ;;  %v999_v28 = vmul.f32 0.03125, %v998_v31 }
 0x70c   :  { %2522 = vrsqrt.f32 %v955_v29  ;;  %v1000_v30 = vmul.f32 %v999_v28, %v999_v28  ;;  %v1008_v41 = vrot.slane %v999_v28, %v2817_v23  ;;  %v3150_v29 = vld [vmem:[%s3462_s17 + $0x28] sm:$0xff] }
 0x70e   :  { %v1002_v32 = vrot.slane %v1000_v30, 7  ;;  %v1009_v47 = vsub.f32 %v3029_v27, %v1008_v41  ;;  %v1010_v48 = vsub.f32 %v3027_v24, %v1008_v41  ;;  %v1155_v41 = vld [vmem:[%s3461_s16] sm:$0xff] }
 0x710   :  { %v1004_v7 = vsub.f32 %v999_v28, %v1002_v32  ;;  %v3156_v28 = vld [vmem:[%s3462_s17 + $0x30] sm:$0xff] }
 0x712   :  { %v1011_v2 = vadd.f32 1e-05, %v1004_v7  ;;  %v3164_v7 = vld [vmem:[%s3462_s17 + $0x38] sm:$0xff] }
 0x714   :  { %2524 = vrsqrt.f32 %v1011_v2 }
 0x716   :  { %v2523_v34 = vpop.eup %2522 }
 0x717   :  { %v960_v63 = vrot.slane %v2523_v34, %v2821_v25 }
 0x719   :  { %v962_v38 = vmul.f32 %v960_v63, %v954_v36  ;;  %v961_v42 = vmul.f32 %v960_v63, %v953_v35 }
 0x71b   :  { %v1025_v43 = vmul.f32 %v2093_v37, %v961_v42  ;;  %v1026_v44 = vmul.f32 %v2093_v37, %v962_v38 }
 0x71d   :  { %v1035_v39 = vadd.f32 %v2094_v40, %v1025_v43  ;;  %v1036_v45 = vadd.f32 %v2094_v40, %v1026_v44 }
 0x71e   :  { %v2525_v46 = vpop.eup %2524 }
 0x71f   :  { %2289 = vmatprep.mubr.msk.f32.mxu1 %vm95_vm0, %v1035_v39  ;;  %v1016_v49 = vrot.slane %v2525_v46, %v2821_v25  ;;  %v3095_v25 = vld [vmem:[%s3462_s17] sm:$0xff] }
 0x720   :  { %2290 = vmatmul.mubr.msk.f32.vlgmr.msra.gmra.mrb[4].mxu1 %vm95_vm0, %v1036_v45 }
 0x721   :  { %v1017_v50 = vmul.f32 %v1016_v49, %v1009_v47  ;;  %v1018_v51 = vmul.f32 %v1016_v49, %v1010_v48  ;;  %v1157_v47 = vld [vmem:[%s3461_s16 + $0x10] sm:$0xff] }
 0x723   :  { %v1027_v52 = vmul.f32 %v2093_v37, %v1017_v50  ;;  %v1028_v53 = vmul.f32 %v2093_v37, %v1018_v51  ;;  %v1158_v50 = vld [vmem:[%s3461_s16 + $0x18] sm:$0xff] }
 0x725   :  { %v1037_v23 = vadd.f32 %v2094_v40, %v1027_v52  ;;  %v1038_v54 = vadd.f32 %v2094_v40, %v1028_v53  ;;  %v1156_v40 = vld [vmem:[%s3461_s16 + $0x8] sm:$0xff]  ;;  %v1159_v53 = vld [vmem:[%s3461_s16 + $0x20] sm:$0xff] }
 0x727   :  { %2292 = vmatprep.mubr.msk.f32.mxu1 %vm95_vm0, %v1037_v23 }
 0x728   :  { %2293 = vmatmul.mubr.msk.f32.gmra.mrb[6].mxu1 %vm95_vm0, %v1038_v54 }
 0x7f3   :  { %v2291_v20 = vpop.f32.mrb[4].mxu1 }
 0x7f4   :  { %v1134_v56 = vadd.f32 %v2291_v20, %v2095_v55  ;;  %v1128_v57 = vpop.f32.mrb[5].mxu1  ;;  %v1160_v20 = vld [vmem:[%s3461_s16 + $0x28] sm:$0xff] }
 0x7f5   :  { %v1129_v58 = vadd.f32 %v2095_v55, %v1128_v57 }
 0x7f6   :  { %v1164_v18 = vmul.f32 %v3120_v1, %v1134_v56  ;;  %v1166_v26 = vmul.f32 %v3132_v21, %v1134_v56  ;;  %v1168_v30 = vmul.f32 %v3150_v29, %v1134_v56  ;;  %v1170_v2 = vmul.f32 %v3164_v7, %v1134_v56 }
 0x7f7   :  { %v3097_v59 = vpack.i.bf16 %v1134_v56, %v1129_v58  ;;  %v1163_v60 = vmul.f32 %v3095_v25, %v1129_v58  ;;  %v1165_v19 = vmul.f32 %v3125_v16, %v1129_v58  ;;  %v1167_v31 = vmul.f32 %v3140_v22, %v1129_v58 }
 0x7f8   :  { %v1169_v32 = vmul.f32 %v3156_v28, %v1129_v58  ;;  %v1161_v58 = vld [vmem:[%s3461_s16 + $0x30] sm:$0xff] }
 0x7f9   :  { %2459 = vrot.lane.b32.xlu0 %v3097_v59, %s2620_s2  ;;  %2299 = vmatprep.mubr.msk.f32.mxu1 %vm95_vm0, %v1163_v60 }
 0x7fb   :  { %v2294_v61 = vpop.f32.mrb[6].mxu1 }
 0x7fc   :  { %v1144_v62 = vadd.f32 %v2294_v61, %v2095_v55  ;;  %v1138_v3 = vpop.f32.mrb[7].mxu1 }
 0x7fd   :  { %v1139_v4 = vadd.f32 %v2095_v55, %v1138_v3 }
 0x7fe   :  { %v1549_v34 = vmul.f32 %v3120_v1, %v1144_v62  ;;  %v1551_v36 = vmul.f32 %v3132_v21, %v1144_v62  ;;  %v1553_v37 = vmul.f32 %v3150_v29, %v1144_v62  ;;  %v1555_v42 = vmul.f32 %v3164_v7, %v1144_v62 }
 0x7ff   :  { %v3103_v5 = vpack.i.bf16 %v1144_v62, %v1139_v4  ;;  %v1548_v33 = vmul.f32 %v3095_v25, %v1139_v4  ;;  %v1550_v35 = vmul.f32 %v3125_v16, %v1139_v4  ;;  %v1552_v63 = vmul.f32 %v3140_v22, %v1139_v4 }
 0x800   :  { %v1554_v38 = vmul.f32 %v3156_v28, %v1139_v4  ;;  %v1162_v4 = vld [vmem:[%s3461_s16 + $0x38] sm:$0xff] }
 0x801   :  { %2464 = vrot.lane.b32.xlu1 %v3103_v5, %s2620_s2 }
 0x86b   :  { %v2460_v6 = vpop.permute.xlu0 %2459 }
 0x86c   :  { %v2462_v8 = vunpack.i.h.bf16 %v2460_v6  ;;  %v2461_v11 = vunpack.i.l.bf16 %v2460_v6 }
 0x86e   :  { %v2419_v13 = vpack.c.bf16 %v2462_v8, %v2461_v11 }
 0x870   :  { %2421 = vmatprep.subr.msk.bf16.mxu1 %vm3109_vm13, %v2419_v13 }
 0x871   :  { %2424 = vmatpush3.bf16.xpose.msk.msra.mxu1 %vm3109_vm13, %v2419_v13 }
 0x873   :  { %v2465_v14 = vpop.permute.xlu1 %2464 }
 0x874   :  { %v2467_v15 = vunpack.i.h.bf16 %v2465_v14  ;;  %v2466_v0 = vunpack.i.l.bf16 %v2465_v14 }
 0x876   :  { %v2429_v17 = vpack.c.bf16 %v2467_v15, %v2466_v0 }
 0x878   :  { %2300 = vmatmul.mubr.msk.f32.vlgmr.msra.gmra.mrb[8].mxu1 %vm95_vm0, %v1164_v18  ;;  %2431 = vmatprep.subr.msk.bf16.mxu1 %vm3109_vm13, %v2429_v17 }
 0x879   :  { %2302 = vmatprep.mubr.msk.f32.mxu1 %vm95_vm0, %v1165_v19  ;;  %2434 = vmatpush3.bf16.xpose.msk.msra.mxu1 %vm3109_vm13, %v2429_v17 }
 0x87c   :  { %2303 = vmatmul.mubr.msk.f32.gmra.mrb[10].mxu1 %vm95_vm0, %v1166_v26 }
 0x87d   :  { %2305 = vmatprep.mubr.msk.f32.mxu1 %vm95_vm0, %v1167_v31 }
 0x880   :  { %2306 = vmatmul.mubr.msk.f32.gmra.mrb[12].mxu1 %vm95_vm0, %v1168_v30 }
 0x881   :  { %2308 = vmatprep.mubr.msk.f32.mxu1 %vm95_vm0, %v1169_v32 }
 0x884   :  { %2309 = vmatmul.mubr.msk.f32.gmra.mrb[14].mxu1 %vm95_vm0, %v1170_v2 }
 0x885   :  { %2331 = vmatprep.mubr.msk.f32.mxu1 %vm95_vm0, %v1548_v33 }
 0x888   :  { %2332 = vmatmul.mubr.msk.f32.vlgmr.msra.gmra.mrb[16].mxu1 %vm95_vm0, %v1549_v34 }
 0x889   :  { %2334 = vmatprep.mubr.msk.f32.mxu1 %vm95_vm0, %v1550_v35 }
 0x88c   :  { %2335 = vmatmul.mubr.msk.f32.gmra.mrb[18].mxu1 %vm95_vm0, %v1551_v36 }
 0x88d   :  { %2337 = vmatprep.mubr.msk.f32.mxu1 %vm95_vm0, %v1552_v63 }
 0x890   :  { %2338 = vmatmul.mubr.msk.f32.gmra.mrb[20].mxu1 %vm95_vm0, %v1553_v37 }
 0x891   :  { %2340 = vmatprep.mubr.msk.f32.mxu1 %vm95_vm0, %v1554_v38 }
 0x894   :  { %2341 = vmatmul.mubr.msk.f32.gmra.mrb[22].mxu1 %vm95_vm0, %v1555_v42 }
 0x94b   :  { %v2301_v43 = vpop.f32.mrb[8].mxu1 }
 0x94c   :  { %v3192_v44 = vadd.f32 %v2301_v43, %v1156_v40  ;;  %v1271_v39 = vpop.f32.mrb[9].mxu1 }
 0x94d   :  { %v3194_v45 = vadd.f32 %v1271_v39, %v1155_v41 }
 0x94e   :  { %v1314_v46 = vsel %vm1310_vm14, %v3192_v44, -inf }
 0x94f   :  { %v2304_v48 = vpop.f32.mrb[10].mxu1  ;;  %1315 = vmax.xlane.f32.xlu1 %v1314_v46  ;;  %v1311_v49 = vsel %vm1310_vm14, %v3194_v45, -inf }
 0x950   :  { %v1281_v51 = vpop.f32.mrb[11].mxu1  ;;  %1312 = vmax.xlane.f32.xlu0 %v1311_v49  ;;  %v3211_v23 = vadd.f32 %v2304_v48, %v1158_v50 }
 0x951   :  { %v3206_v52 = vadd.f32 %v1281_v51, %v1157_v47 }
 0x952   :  { %v1320_v62 = vsel %vm1310_vm14, %v3211_v23, -inf }
 0x953   :  { %v2307_v54 = vpop.f32.mrb[12].mxu1  ;;  %v1317_v55 = vsel %vm1310_vm14, %v3206_v52, -inf }
 0x954   :  { %v1291_v56 = vpop.f32.mrb[13].mxu1  ;;  %1318 = vmax.xlane.f32.xlu0 %v1317_v55  ;;  %v3223_v60 = vadd.f32 %v2307_v54, %v1160_v20 }
 0x955   :  { %v3218_v57 = vadd.f32 %v1291_v56, %v1159_v53 }
 0x956   :  { %v1326_v13 = vsel %vm1310_vm14, %v3223_v60, -inf }
 0x957   :  { %v2310_v61 = vpop.f32.mrb[14].mxu1  ;;  %v1323_v3 = vsel %vm1310_vm14, %v3218_v57, -inf }
 0x958   :  { %v1301_v6 = vpop.f32.mrb[15].mxu1  ;;  %1321 = vmax.xlane.f32.xlu0 %v1320_v62  ;;  %1324 = vmax.xlane.f32.xlu1 %v1323_v3  ;;  %v3234_v11 = vadd.f32 %v2310_v61, %v1162_v4 }
 0x959   :  { %v3232_v8 = vadd.f32 %v1301_v6, %v1161_v58 }
 0x95a   :  { %v1332_v19 = vsel %vm1310_vm14, %v3234_v11, -inf }
 0x95b   :  { %v2333_v12 = vpop.f32.mrb[16].mxu1  ;;  %v1329_v14 = vsel %vm1310_vm14, %v3232_v8, -inf }
 0x95c   :  { %1327 = vmax.xlane.f32.xlu0 %v1326_v13  ;;  %1330 = vmax.xlane.f32.xlu1 %v1329_v14  ;;  %v1656_v15 = vpop.f32.mrb[17].mxu1  ;;  %v3242_v17 = vadd.f32 %v2333_v12, %v1156_v40 }
 0x95d   :  { %v3240_v0 = vadd.f32 %v1656_v15, %v1155_v41 }
 0x95e   :  { %v1698_v33 = vsel %vm1310_vm14, %v3242_v17, -inf }
 0x95f   :  { %v2336_v18 = vpop.f32.mrb[18].mxu1  ;;  %v1695_v26 = vsel %vm1310_vm14, %v3240_v0, -inf }
 0x960   :  { %1333 = vmax.xlane.f32.xlu0 %v1332_v19  ;;  %v1666_v31 = vpop.f32.mrb[19].mxu1  ;;  %1696 = vmax.xlane.f32.xlu1 %v1695_v26  ;;  %v3250_v32 = vadd.f32 %v2336_v18, %v1158_v50 }
 0x961   :  { %v3248_v30 = vadd.f32 %v1666_v31, %v1157_v47 }
 0x962   :  { %v1704_v38 = vsel %vm1310_vm14, %v3250_v32, -inf }
 0x963   :  { %v2339_v2 = vpop.f32.mrb[20].mxu1  ;;  %v1701_v34 = vsel %vm1310_vm14, %v3248_v30, -inf }
 0x964   :  { %1699 = vmax.xlane.f32.xlu0 %v1698_v33  ;;  %v1676_v35 = vpop.f32.mrb[21].mxu1  ;;  %1702 = vmax.xlane.f32.xlu1 %v1701_v34  ;;  %v3258_v63 = vadd.f32 %v2339_v2, %v1160_v20 }
 0x965   :  { %v3256_v36 = vadd.f32 %v1676_v35, %v1159_v53 }
 0x966   :  { %v1710_v39 = vsel %vm1310_vm14, %v3258_v63, -inf }
 0x967   :  { %v2342_v37 = vpop.f32.mrb[22].mxu1  ;;  %v1707_v42 = vsel %vm1310_vm14, %v3256_v36, -inf }
 0x968   :  { %1705 = vmax.xlane.f32.xlu0 %v1704_v38  ;;  %v1686_v40 = vpop.f32.mrb[23].mxu1  ;;  %1708 = vmax.xlane.f32.xlu1 %v1707_v42  ;;  %v3266_v43 = vadd.f32 %v2342_v37, %v1162_v4 }
 0x969   :  { %v3264_v41 = vadd.f32 %v1686_v40, %v1161_v58 }
 0x96a   :  { %v1716_v47 = vsel %vm1310_vm14, %v3266_v43, -inf }
 0x96b   :  { %v1713_v46 = vsel %vm1310_vm14, %v3264_v41, -inf }
 0x96c   :  { %1711 = vmax.xlane.f32.xlu0 %v1710_v39  ;;  %1714 = vmax.xlane.f32.xlu1 %v1713_v46 }
 0x970   :  { %1717 = vmax.xlane.f32.xlu0 %v1716_v47 }
 0x97d   :  { %2469 = vrot.lane.b32.xlu1 %v3097_v59, %s2621_s10 }
 0x9dc   :  { %v1316_v48 = vpop.xlane.xlu1 %1315 }
 0x9dd   :  { %v1336_v49 = vsub.f32 %v3192_v44, %v1316_v48  ;;  %v1313_v50 = vpop.xlane.xlu0 %1312 }
 0x9de   :  { %v1335_v51 = vsub.f32 %v3194_v45, %v1313_v50 }
 0x9df   :  { %v1345_v53 = vmul.f32 1.442695, %v1336_v49 }
 0x9e0   :  { %v1343_v54 = vmul.f32 1.442695, %v1335_v51 }
 0x9e1   :  { %2526 = vpow2.f32 %v1345_v53  ;;  %v1319_v55 = vpop.xlane.xlu0 %1318 }
 0x9e2   :  { %2528 = vpow2.f32 %v1343_v54  ;;  %v1337_v20 = vsub.f32 %v3206_v52, %v1319_v55 }
 0x9e4   :  { %v1347_v56 = vmul.f32 1.442695, %v1337_v20 }
 0x9e5   :  { %v1322_v58 = vpop.xlane.xlu0 %1321  ;;  %v1325_v61 = vpop.xlane.xlu1 %1324 }
 0x9e6   :  { %2530 = vpow2.f32 %v1347_v56  ;;  %v1338_v62 = vsub.f32 %v3211_v23, %v1322_v58  ;;  %v1339_v59 = vsub.f32 %v3218_v57, %v1325_v61 }
 0x9e8   :  { %v1349_v3 = vmul.f32 1.442695, %v1338_v62  ;;  %v1351_v44 = vmul.f32 1.442695, %v1339_v59 }
 0x9e9   :  { %v1328_v4 = vpop.xlane.xlu0 %1327  ;;  %v1331_v6 = vpop.xlane.xlu1 %1330 }
 0x9ea   :  { %2532 = vpow2.f32 %v1349_v3  ;;  %v1340_v45 = vsub.f32 %v3223_v60, %v1328_v4  ;;  %v1341_v12 = vsub.f32 %v3232_v8, %v1331_v6 }
 0x9eb   :  { %v3283_v13 = vpop.eup %2526  ;;  %2534 = vpow2.f32 %v1351_v44 }
 0x9ec   :  { %v3285_v52 = vpop.eup %2528  ;;  %v1353_v14 = vmul.f32 1.442695, %v1340_v45  ;;  %v1355_v15 = vmul.f32 1.442695, %v1341_v12  ;;  %v1362_v23 = vsel %vm1310_vm14, %v3283_v13, 0.0 }
 0x9ed   :  { %v1334_v57 = vpop.xlane.xlu0 %1333  ;;  %1363 = vadd.xlane.f32.xlu0 %v1362_v23  ;;  %v1697_v18 = vpop.xlane.xlu1 %1696  ;;  %v1359_v19 = vsel %vm1310_vm14, %v3285_v52, 0.0 }
 0x9ee   :  { %2536 = vpow2.f32 %v1353_v14  ;;  %v1342_v60 = vsub.f32 %v3234_v11, %v1334_v57  ;;  %v1719_v8 = vsub.f32 %v3240_v0, %v1697_v18  ;;  %1360 = vadd.xlane.f32.xlu1 %v1359_v19 }
 0x9ef   :  { %2538 = vpow2.f32 %v1355_v15 }
 0x9f0   :  { %v3293_v26 = vpop.eup %2530  ;;  %v1357_v31 = vmul.f32 1.442695, %v1342_v60  ;;  %v1727_v2 = vmul.f32 1.442695, %v1719_v8 }
 0x9f1   :  { %v1700_v33 = vpop.xlane.xlu0 %1699  ;;  %v1703_v34 = vpop.xlane.xlu1 %1702  ;;  %v1365_v35 = vsel %vm1310_vm14, %v3293_v26, 0.0 }
 0x9f2   :  { %2540 = vpow2.f32 %v1357_v31  ;;  %v1720_v37 = vsub.f32 %v3242_v17, %v1700_v33  ;;  %v1721_v38 = vsub.f32 %v3248_v30, %v1703_v34  ;;  %1366 = vadd.xlane.f32.xlu1 %v1365_v35 }
 0x9f3   :  { %2542 = vpow2.f32 %v1727_v2 }
 0x9f4   :  { %v3299_v11 = vpop.eup %2532  ;;  %v1729_v0 = vmul.f32 1.442695, %v1720_v37  ;;  %v1731_v42 = vmul.f32 1.442695, %v1721_v38 }
 0x9f5   :  { %v3301_v40 = vpop.eup %2534  ;;  %v1706_v39 = vpop.xlane.xlu0 %1705  ;;  %v1368_v47 = vsel %vm1310_vm14, %v3299_v11, 0.0 }
 0x9f6   :  { %v1709_v46 = vpop.xlane.xlu1 %1708  ;;  %2544 = vpow2.f32 %v1729_v0  ;;  %v1722_v48 = vsub.f32 %v3250_v32, %v1706_v39  ;;  %1369 = vadd.xlane.f32.xlu0 %v1368_v47  ;;  %v1371_v17 = vsel %vm1310_vm14, %v3301_v40, 0.0 }
 0x9f7   :  { %2546 = vpow2.f32 %v1731_v42  ;;  %1372 = vadd.xlane.f32.xlu1 %v1371_v17  ;;  %v1723_v50 = vsub.f32 %v3256_v36, %v1709_v46 }
 0x9f8   :  { %v3308_v30 = vpop.eup %2536  ;;  %v1733_v49 = vmul.f32 1.442695, %v1722_v48 }
 0x9f9   :  { %v3311_v51 = vpop.eup %2538  ;;  %v1712_v53 = vpop.xlane.xlu0 %1711  ;;  %v1374_v55 = vsel %vm1310_vm14, %v3308_v30, 0.0  ;;  %v1735_v58 = vmul.f32 1.442695, %v1723_v50 }
 0x9fa   :  { %v1715_v54 = vpop.xlane.xlu1 %1714  ;;  %2548 = vpow2.f32 %v1733_v49  ;;  %v1724_v32 = vsub.f32 %v3258_v63, %v1712_v53  ;;  %1375 = vadd.xlane.f32.xlu0 %v1374_v55  ;;  %v1377_v20 = vsel %vm1310_vm14, %v3311_v51, 0.0 }
 0x9fb   :  { %1378 = vadd.xlane.f32.xlu1 %v1377_v20  ;;  %v1725_v36 = vsub.f32 %v3264_v41, %v1715_v54 }
 0x9fc   :  { %v3318_v56 = vpop.eup %2540  ;;  %v1737_v61 = vmul.f32 1.442695, %v1724_v32 }
 0x9fd   :  { %v3321_v62 = vpop.eup %2542  ;;  %v1718_v59 = vpop.xlane.xlu0 %1717  ;;  %v1380_v44 = vsel %vm1310_vm14, %v3318_v56, 0.0  ;;  %v1739_v12 = vmul.f32 1.442695, %v1725_v36 }
 0x9fe   :  { %v2470_v3 = vpop.permute.xlu1 %2469  ;;  %2550 = vpow2.f32 %v1737_v61  ;;  %1381 = vadd.xlane.f32.xlu0 %v1380_v44  ;;  %v1743_v6 = vsel %vm1310_vm14, %v3321_v62, 0.0  ;;  %v1726_v41 = vsub.f32 %v3266_v43, %v1718_v59 }
 0x9ff   :  { %v2472_v63 = vunpack.i.h.bf16 %v2470_v3  ;;  %v2471_v4 = vunpack.i.l.bf16 %v2470_v3  ;;  %2552 = vpow2.f32 %v1735_v58  ;;  %1744 = vadd.xlane.f32.xlu1 %v1743_v6 }
 0xa00   :  { %v3327_v45 = vpop.eup %2544  ;;  %2554 = vpow2.f32 %v1739_v12  ;;  %v1741_v19 = vmul.f32 1.442695, %v1726_v41 }
 0xa01   :  { %v2425_v14 = vpack.c.bf16 %v2472_v63, %v2471_v4  ;;  %v3330_v15 = vpop.eup %2546  ;;  %v1746_v23 = vsel %vm1310_vm14, %v3327_v45, 0.0 }
 0xa02   :  { %1747 = vadd.xlane.f32.xlu0 %v1746_v23  ;;  %v1749_v57 = vsel %vm1310_vm14, %v3330_v15, 0.0  ;;  %2556 = vpow2.f32 %v1741_v19 }
 0xa03   :  { %2426 = vmatprep.subr.bf16.mxu0 %v2425_v14  ;;  %1750 = vadd.xlane.f32.xlu1 %v1749_v57 }
 0xa04   :  { %2428 = vmatpush3.bf16.msra.mxu0 %v2425_v14  ;;  %v3336_v18 = vpop.eup %2548 }
 0xa05   :  { %v1752_v43 = vsel %vm1310_vm14, %v3336_v18, 0.0 }
 0xa06   :  { %1753 = vadd.xlane.f32.xlu0 %v1752_v43 }
 0xa08   :  { %v3340_v60 = vpop.eup %2550 }
 0xa09   :  { %v1758_v8 = vsel %vm1310_vm14, %v3340_v60, 0.0  ;;  %v3344_v31 = vpop.eup %2552 }
 0xa0a   :  { %1759 = vadd.xlane.f32.xlu0 %v1758_v8  ;;  %v1755_v2 = vsel %vm1310_vm14, %v3344_v31, 0.0  ;;  %v3348_v33 = vpop.eup %2554 }
 0xa0b   :  { %v1761_v34 = vsel %vm1310_vm14, %v3348_v33, 0.0 }
 0xa0c   :  { %v3352_v35 = vpop.eup %2556 }
 0xa0d   :  { %v1764_v37 = vsel %vm1310_vm14, %v3352_v35, 0.0 }
 0xa0e   :  { %1756 = vadd.xlane.f32.xlu0 %v1755_v2 }
 0xa12   :  { %1762 = vadd.xlane.f32.xlu0 %v1761_v34 }
 0xa14   :  { %2474 = vrot.lane.b32.xlu1 %v3103_v5, %s2621_s10 }
 0xa16   :  { %1765 = vadd.xlane.f32.xlu0 %v1764_v37 }
 0xa7a   :  { %v1364_v38 = vpop.xlane.xlu0 %1363 }
 0xa7b   :  { %2558 = vrcp.f32 %v1364_v38  ;;  %v1361_v0 = vpop.xlane.xlu1 %1360 }
 0xa7c   :  { %2560 = vrcp.f32 %v1361_v0 }
 0xa7f   :  { %v1367_v42 = vpop.xlane.xlu1 %1366 }
 0xa80   :  { %2562 = vrcp.f32 %v1367_v42 }
 0xa83   :  { %v1370_v39 = vpop.xlane.xlu0 %1369 }
 0xa84   :  { %2564 = vrcp.f32 %v1370_v39  ;;  %v1373_v46 = vpop.xlane.xlu1 %1372 }
 0xa85   :  { %v2559_v47 = vpop.eup %2558  ;;  %2566 = vrcp.f32 %v1373_v46 }
 0xa86   :  { %v2561_v48 = vpop.eup %2560  ;;  %v1386_v5 = vmul.f32 %v2559_v47, %v3283_v13 }
 0xa87   :  { %v1376_v17 = vpop.xlane.xlu0 %1375  ;;  %v1384_v49 = vmul.f32 %v2561_v48, %v3285_v52 }
 0xa88   :  { %2568 = vrcp.f32 %v1376_v17  ;;  %v1379_v50 = vpop.xlane.xlu1 %1378 }
 0xa89   :  { %2570 = vrcp.f32 %v1379_v50  ;;  %2315 = vmatprep.mubr.msk.f32.mxu0 %vm1310_vm14, %v1384_v49 }
 0xa8a   :  { %v2563_v53 = vpop.eup %2562  ;;  %2316 = vmatmul.mubr.msk.f32.vlgmr.msra.gmra.mrb[6].mxu0 %vm1310_vm14, %v1386_v5 }
 0xa8b   :  { %v1382_v54 = vpop.xlane.xlu0 %1381  ;;  %v1388_v55 = vmul.f32 %v2563_v53, %v3293_v26 }
 0xa8c   :  { %2572 = vrcp.f32 %v1382_v54  ;;  %v1745_v32 = vpop.xlane.xlu1 %1744 }
 0xa8d   :  { %2318 = vmatprep.mubr.msk.f32.mxu0 %vm1310_vm14, %v1388_v55  ;;  %2574 = vrcp.f32 %v1745_v32 }
 0xa8e   :  { %v2565_v20 = vpop.eup %2564 }
 0xa8f   :  { %v2567_v52 = vpop.eup %2566  ;;  %v1748_v58 = vpop.xlane.xlu0 %1747  ;;  %v1390_v13 = vmul.f32 %v2565_v20, %v3299_v11 }
 0xa90   :  { %2576 = vrcp.f32 %v1748_v58  ;;  %v1392_v61 = vmul.f32 %v2567_v52, %v3301_v40  ;;  %v1751_v36 = vpop.xlane.xlu1 %1750 }
 0xa91   :  { %2319 = vmatmul.mubr.msk.f32.gmra.mrb[8].mxu0 %vm1310_vm14, %v1390_v13  ;;  %2578 = vrcp.f32 %v1751_v36 }
 0xa92   :  { %v2569_v59 = vpop.eup %2568  ;;  %2321 = vmatprep.mubr.msk.f32.mxu0 %vm1310_vm14, %v1392_v61 }
 0xa93   :  { %v2571_v26 = vpop.eup %2570  ;;  %v1754_v3 = vpop.xlane.xlu0 %1753  ;;  %v1394_v44 = vmul.f32 %v2569_v59, %v3308_v30 }
 0xa94   :  { %2580 = vrcp.f32 %v1754_v3  ;;  %v1396_v63 = vmul.f32 %v2571_v26, %v3311_v51  ;;  %v2475_v4 = vpop.permute.xlu1 %2474 }
 0xa95   :  { %2322 = vmatmul.mubr.msk.f32.gmra.mrb[10].mxu0 %vm1310_vm14, %v1394_v44  ;;  %v2477_v6 = vunpack.i.h.bf16 %v2475_v4  ;;  %v2476_v40 = vunpack.i.l.bf16 %v2475_v4 }
 0xa96   :  { %v2573_v11 = vpop.eup %2572  ;;  %2324 = vmatprep.mubr.msk.f32.mxu0 %vm1310_vm14, %v1396_v63 }
 0xa97   :  { %v1760_v12 = vpop.xlane.xlu0 %1759  ;;  %v1398_v41 = vmul.f32 %v2573_v11, %v3318_v56  ;;  %v2575_v14 = vpop.eup %2574  ;;  %v2435_v23 = vpack.c.bf16 %v2477_v6, %v2476_v40 }
 0xa98   :  { %v1768_v30 = vmul.f32 %v2575_v14, %v3321_v62  ;;  %2582 = vrcp.f32 %v1760_v12 }
 0xa99   :  { %2325 = vmatmul.mubr.msk.f32.gmra.mrb[12].mxu0 %vm1310_vm14, %v1398_v41  ;;  %2436 = vmatprep.subr.bf16.mxu0 %v2435_v23 }
 0xa9a   :  { %v2577_v57 = vpop.eup %2576  ;;  %2438 = vmatpush3.bf16.msra.mxu0 %v2435_v23  ;;  %2347 = vmatprep.mubr.msk.f32.mxu0 %vm1310_vm14, %v1768_v30 }
 0xa9b   :  { %v1770_v51 = vmul.f32 %v2577_v57, %v3327_v45  ;;  %v1757_v19 = vpop.xlane.xlu0 %1756  ;;  %v2579_v43 = vpop.eup %2578 }
 0xa9c   :  { %2584 = vrcp.f32 %v1757_v19  ;;  %v1772_v8 = vmul.f32 %v2579_v43, %v3330_v15 }
 0xa9d   :  { %2348 = vmatmul.mubr.msk.f32.vlgmr.msra.gmra.mrb[14].mxu0 %vm1310_vm14, %v1770_v51 }
 0xa9e   :  { %v2581_v56 = vpop.eup %2580  ;;  %2350 = vmatprep.mubr.msk.f32.mxu0 %vm1310_vm14, %v1772_v8 }
 0xa9f   :  { %v1763_v2 = vpop.xlane.xlu0 %1762  ;;  %v1774_v62 = vmul.f32 %v2581_v56, %v3336_v18 }
 0xaa0   :  { %2586 = vrcp.f32 %v1763_v2 }
 0xaa1   :  { %2351 = vmatmul.mubr.msk.f32.gmra.mrb[16].mxu0 %vm1310_vm14, %v1774_v62 }
 0xaa2   :  { %v2583_v34 = vpop.eup %2582 }
 0xaa3   :  { %v1766_v45 = vpop.xlane.xlu0 %1765  ;;  %v1778_v0 = vmul.f32 %v2583_v34, %v3340_v60  ;;  %v1933_v60 = vld [vmem:[%s3463_s18 + $0x8] sm:$0xff] }
 0xaa4   :  { %2588 = vrcp.f32 %v1766_v45 }
 0xaa6   :  { %v2585_v37 = vpop.eup %2584 }
 0xaa7   :  { %v1776_v38 = vmul.f32 %v2585_v37, %v3344_v31  ;;  %v1932_v31 = vld [vmem:[%s3463_s18] sm:$0xff] }
 0xaa8   :  { %v2439_v46 = vpack.c.bf16 %v1933_v60, %v1932_v31 }
 0xaa9   :  { %2353 = vmatprep.mubr.msk.f32.mxu0 %vm1310_vm14, %v1776_v38 }
 0xaaa   :  { %v2587_v15 = vpop.eup %2586  ;;  %2354 = vmatmul.mubr.msk.f32.gmra.mrb[18].mxu0 %vm1310_vm14, %v1778_v0  ;;  %2440 = vmatprep.subr.bf16.mxu1 %v2439_v46 }
 0xaab   :  { %v1780_v42 = vmul.f32 %v2587_v15, %v3348_v33  ;;  %2442 = vmatpush3.bf16.msra.mxu1 %v2439_v46  ;;  %v1934_v33 = vld [vmem:[%s3463_s18 + $0x10] sm:$0xff] }
 0xaad   :  { %2356 = vmatprep.mubr.msk.f32.mxu0 %vm1310_vm14, %v1780_v42 }
 0xaae   :  { %v2589_v18 = vpop.eup %2588 }
 0xaaf   :  { %v1782_v39 = vmul.f32 %v2589_v18, %v3352_v35  ;;  %v1935_v35 = vld [vmem:[%s3463_s18 + $0x18] sm:$0xff] }
 0xab0   :  { %v2443_v47 = vpack.c.bf16 %v1935_v35, %v1934_v33 }
 0xab1   :  { %2357 = vmatmul.mubr.msk.f32.gmra.mrb[20].mxu0 %vm1310_vm14, %v1782_v39 }
 0xab2   :  { %2444 = vmatprep.subr.bf16.mxu1 %v2443_v47 }
 0xab3   :  { %2446 = vmatpush3.bf16.msra.mxu1 %v2443_v47 }
 0xb5d   :  { %v2317_v48 = vpop.f32.mrb[6].mxu0 }
 0xb5e   :  { %v1495_v17 = vpop.f32.mrb[7].mxu0  ;;  %v1535_v5 = vmul.f32 %v2317_v48, %v3120_v1 }
 0xb5f   :  { %v1534_v54 = vmul.f32 %v1495_v17, %v3095_v25 }
 0xb64   :  { %v2320_v49 = vpop.f32.mrb[8].mxu0 }
 0xb65   :  { %v1537_v50 = vmul.f32 %v2320_v49, %v3132_v21  ;;  %v1505_v53 = vpop.f32.mrb[9].mxu0 }
 0xb66   :  { %v1536_v55 = vmul.f32 %v1505_v53, %v3125_v16 }
 0xb67   :  { %v1543_v32 = vadd.f32 %v1537_v50, %v1535_v5 }
 0xb68   :  { %v1542_v20 = vadd.f32 %v1536_v55, %v1534_v54  ;;  %v2323_v52 = vpop.f32.mrb[10].mxu0 }
 0xb69   :  { %v1539_v58 = vmul.f32 %v2323_v52, %v3150_v29  ;;  %v1515_v13 = vpop.f32.mrb[11].mxu0 }
 0xb6a   :  { %v1538_v61 = vmul.f32 %v1515_v13, %v3140_v22 }
 0xb6b   :  { %v1545_v36 = vadd.f32 %v1543_v32, %v1539_v58 }
 0xb6c   :  { %v1544_v59 = vadd.f32 %v1542_v20, %v1538_v61  ;;  %v2326_v26 = vpop.f32.mrb[12].mxu0 }
 0xb6d   :  { %v1541_v3 = vmul.f32 %v2326_v26, %v3164_v7  ;;  %v1525_v44 = vpop.f32.mrb[13].mxu0 }
 0xb6e   :  { %v1540_v63 = vmul.f32 %v1525_v44, %v3156_v28 }
 0xb6f   :  { %v1547_v4 = vadd.f32 %v1545_v36, %v1541_v3 }
 0xb70   :  { %v1546_v11 = vadd.f32 %v1544_v59, %v1540_v63  ;;  %v2349_v6 = vpop.f32.mrb[14].mxu0 }
 0xb71   :  { %v1879_v40 = vpop.f32.mrb[15].mxu0  ;;  %v1919_v41 = vmul.f32 %v2349_v6, %v3120_v1 }
 0xb72   :  { %2367 = vmatprep.mubr.msk.f32.mxu1 %vm95_vm0, %v1546_v11  ;;  %v1918_v30 = vmul.f32 %v1879_v40, %v3095_v25 }
 0xb73   :  { %2368 = vmatmul.mubr.msk.f32.vlgmr.msra.gmra.mrb[24].mxu1 %vm95_vm0, %v1547_v4 }
 0xb74   :  { %v2352_v12 = vpop.f32.mrb[16].mxu0 }
 0xb75   :  { %v1921_v14 = vmul.f32 %v2352_v12, %v3132_v21  ;;  %v1889_v23 = vpop.f32.mrb[17].mxu0 }
 0xb76   :  { %v1920_v57 = vmul.f32 %v1889_v23, %v3125_v16 }
 0xb77   :  { %v1927_v51 = vadd.f32 %v1921_v14, %v1919_v41 }
 0xb78   :  { %v1926_v19 = vadd.f32 %v1920_v57, %v1918_v30 }
 0xb7d   :  { %v2355_v43 = vpop.f32.mrb[18].mxu0 }
 0xb7e   :  { %v1923_v8 = vmul.f32 %v2355_v43, %v3150_v29  ;;  %v1899_v56 = vpop.f32.mrb[19].mxu0  ;;  %v2140_v29 = vld [vmem:[%s3464_s19] ss:$0 sm:$0xff]  ;;  %s2590_s19 = scalar_lea.vmem %s2058_s1, 512 }
 0xb7f   :  { %v1922_v2 = vmul.f32 %v1899_v56, %v3140_v22  ;;  %p2591_p0 = scmp.ne.s32.totalorder %s2058_s1, %s2590_s19  ;;  %p2596_p2 = scmp.lt.s32.totalorder %s2590_s19, %s2590_s19 }
 0xb80   :  { %v1929_v62 = vadd.f32 %v1927_v51, %v1923_v8 }
 0xb81   :  { %v1928_v45 = vadd.f32 %v1926_v19, %v1922_v2  ;;  %p2597_p3 = por %p2596_p2, %p2595_p1 }
 0xb83   :  { %p2598_p4 = pnand %p2597_p3, %p2591_p0 }
 0xb84   :  { %v2358_v34 = vpop.f32.mrb[20].mxu0 }
 0xb85   :  { %v1925_v1 = vmul.f32 %v2358_v34, %v3164_v7  ;;  %v1909_v37 = vpop.f32.mrb[21].mxu0 }
 0xb86   :  { %v1924_v21 = vmul.f32 %v1909_v37, %v3156_v28 }
 0xb87   :  { %v1931_v38 = vadd.f32 %v1929_v62, %v1925_v1 }
 0xb88   :  { %v1930_v25 = vadd.f32 %v1928_v45, %v1924_v21 }
 0xb8a   :  { %2370 = vmatprep.mubr.msk.f32.mxu1 %vm95_vm0, %v1930_v25 }
 0xb8b   :  { %2371 = vmatmul.mubr.msk.f32.gmra.mrb[26].mxu1 %vm95_vm0, %v1931_v38 }
 0xc46   :  { %v2369_v16 = vpop.f32.mrb[24].mxu1 }
 0xc47   :  { %v2034_v22 = vadd.f32 %v2369_v16, %v3011_v9  ;;  %v2014_v0 = vpop.f32.mrb[25].mxu1 }
 0xc48   :  { %v2033_v15 = vadd.f32 %v2014_v0, %v3013_v10 }
 0xc49   :  { %v2045_v7 = vadd.f32 %v2140_v29, %v2034_v22 }
 0xc4a   :  { %v2044_v42 = vadd.f32 %v2140_v29, %v2033_v15 }
 0xc4b   :  { %2049 = vst.msk [vmem:[#allocation2 + $0x8] sm:$0xff] %vm95_vm0, %v2045_v7 }
 0xc4c   :  { %2048 = vst.msk [vmem:[#allocation2] sm:$0xff] %vm95_vm0, %v2044_v42 }
 0xc5e   :  { %v2372_v28 = vpop.f32.mrb[26].mxu1 }
 0xc5f   :  { %v2036_v18 = vadd.f32 %v2372_v28, %v3027_v24  ;;  %v2024_v39 = vpop.f32.mrb[27].mxu1 }
 0xc60   :  { %v2035_v31 = vadd.f32 %v2024_v39, %v3029_v27 }
 0xc61   :  { %v2047_v60 = vadd.f32 %v2140_v29, %v2036_v18 }
 0xc62   :  { %v2046_v46 = vadd.f32 %v2140_v29, %v2035_v31 }
 0xc63   :  { %2051 = vst.msk [vmem:[#allocation2 + $0x18] sm:$0xff] %vm95_vm0, %v2047_v60 }
 0xc64   :  { %2050 = vst.msk [vmem:[#allocation2 + $0x10] sm:$0xff] %vm95_vm0, %v2046_v46 }
 0xc65   :  { %2601 = shalt.err (!%p2598_p4)
}
 0xc66   :  { %s2602_s29 = scalar_lea.hbm %s3467_s22, 512 }
 0xc67   :  { %p2603_p5 = scmp.ne.s32.totalorder %s3467_s22, %s2602_s29  ;;  %p2606_p6 = scmp.lt.u32.totalorder %s2602_s29, %s3467_s22 }
 0xc69   :  { %p2608_p7 = pnand %p2606_p6, %p2603_p5 }
 0xc6b   :  { %2611 = shalt.err (!%p2608_p7)
}
 0xc6c   :  { %s2623_s24 = smov 128   ;;  %s2624_s8 = smov 8  }
 0xc6d   :  { %2063 = dma.vmem_to_hbm [thread:$0]  %s2058_s1, 512, %s3467_s22, [#allocation3], %s2623_s24, %s2623_s24, %s2624_s8  }
 0xc6e   :  { %2612 = dma.done.wait [#allocation3], 512  }
 0xc6f   :  { %2613 = vsyncadd [#allocation3], 4294966784 }
 0xc70   :  { %2067 = vsyncpa [#allocation3], 1 }

</bundles_post_ra>
